<compile_context>
chip_gen: v6e
topology: v6e:2x2x1
jax: 0.10.0
libtpu: 0.0.40
codegen_flags: <defaults>
</compile_context>

<pallas_src>
import functools

import jax
import jax.numpy as jnp
from jax import lax
from jax.experimental import pallas as pl
from jax.experimental.pallas import tpu as pltpu

EPS = 1e-5
NEG_SLOPE = 0.01            # nn.LeakyReLU default negative_slope
LANE = 128


def _round_up(x, m):
    return ((x + m - 1) // m) * m


def _leaky_relu(x):
    return jnp.where(x >= 0, x, NEG_SLOPE * x)


def _vmem_limit_bytes():
    """~3/4 of physical VMEM: ~48 MiB on v7x, ~96 MiB on v5e/v6e."""
    try:
        cap = int(pltpu.get_tpu_info().vmem_capacity_bytes)
    except Exception:
        cap = 128 * 1024 * 1024
    return max(min(cap * 3 // 4, 96 * 1024 * 1024), 32 * 1024 * 1024)


def _pick_bt(n, l, cmax):
    """Samples per grid step: fill the MXU M dim and amortize per-step overhead
    while keeping the f32 in-kernel intermediates (rows x cmax) small."""
    max_rows = max(8, min(4096, (4 * 1024 * 1024) // (cmax * 4)))
    target_rows = 512
    best = 1
    for bt in range(1, n + 1):
        if n % bt:
            continue
        if bt * l > max_rows and bt > 1:
            break
        best = bt
        if bt * l >= target_rows:
            break
    return best


def _shift_taps(p0, p1, p2, bt, l, c):
    """Per-sample realignment of k=0/k=2 tap results for a k=3, pad=1 conv:
    out[l] = p0[l-1] + p1[l] + p2[l+1], with zeros past each sample's edge."""
    zrow = jnp.zeros((bt, 1, c), p1.dtype)
    return (p1
            + jnp.concatenate([zrow, p0[:, :l - 1, :]], axis=1)
            + jnp.concatenate([p2[:, 1:, :], zrow], axis=1))


# ---------------- pass 1: conv1 taps + fused 1x1 downsample + BN partials ----
def _conv1_ds_kernel(x_ref, wk0_ref, wk1d_ref, wk2_ref, a1_ref, st_ref):
    # x_ref:   (Bt, L, Cpi) channels-last input tile (compute dtype)
    # wk0/wk2: (Cpi, Cpo) conv1 taps k=0 / k=2
    # wk1d:    (Cpi, 2*Cpo) conv1 tap k=1 concatenated with the 1x1 downsample
    # a1_ref:  (Bt, L, Cpo) conv1 pre-BN output (compute dtype)
    # st_ref:  (1, 4, Cpo)  [sum(a1), sum(a1^2), sum(r), sum(r^2)] in f32
    bt, l, cpi = x_ref.shape
    cpo = a1_ref.shape[2]
    f32 = jnp.float32

    x = x_ref[...].reshape(bt * l, cpi)

    # fused center tap + 1x1 downsample: one MXU push on the shared operand
    both = jnp.dot(x, wk1d_ref[...], preferred_element_type=f32)   # (Bt*L, 2*Cpo)
    p0 = jnp.dot(x, wk0_ref[...], preferred_element_type=f32)
    p2 = jnp.dot(x, wk2_ref[...], preferred_element_type=f32)

    c1 = both[:, :cpo].reshape(bt, l, cpo)      # conv1 k=1 tap
    r = both[:, cpo:]                           # downsample branch (flat, f32)
    a1 = _shift_taps(p0.reshape(bt, l, cpo), c1, p2.reshape(bt, l, cpo), bt, l, cpo)

    a1_ref[...] = a1.astype(a1_ref.dtype)       # bf16 store (halves HBM traffic)

    # BN partial statistics in f32, computed before any downcast.
    # TODO(synk): for very long N*L consider centered partials (subtract a
    #             per-tile reference before squaring) to avoid cancellation.
    a1f = a1.reshape(bt * l, cpo)
    st_ref[0, 0:1, :] = jnp.sum(a1f, axis=0, keepdims=True)
    st_ref[0, 1:2, :] = jnp.sum(a1f * a1f, axis=0, keepdims=True)
    st_ref[0, 2:3, :] = jnp.sum(r, axis=0, keepdims=True)
    st_ref[0, 3:4, :] = jnp.sum(r * r, axis=0, keepdims=True)


# ---------------- pass 2: BN1 + LeakyReLU + conv2 + BN2 partials -------------
def _bn1_conv2_kernel(a1_ref, aff1_ref, w2_ref, a2_ref, st_ref):
    # a1_ref:  (Bt, L, Cpo) pre-BN conv1 output (compute dtype)
    # aff1_ref:(2, Cpo) folded BN1 [scale, shift] (f32)
    # w2_ref:  (3, Cpo, Cpo) conv2 taps (compute dtype)
    # a2_ref:  (Bt, L, Cpo) conv2 pre-BN output (compute dtype)
    # st_ref:  (1, 2, Cpo)  [sum(a2), sum(a2^2)] in f32
    bt, l, cpo = a1_ref.shape
    f32 = jnp.float32
    cdt = w2_ref.dtype

    a1 = a1_ref[...].astype(f32).reshape(bt * l, cpo)
    y = _leaky_relu(a1 * aff1_ref[0:1, :] + aff1_ref[1:2, :])      # f32
    yc = y.astype(cdt)                                             # single cast

    p0 = jnp.dot(yc, w2_ref[0], preferred_element_type=f32).reshape(bt, l, cpo)
    p1 = jnp.dot(yc, w2_ref[1], preferred_element_type=f32).reshape(bt, l, cpo)
    p2 = jnp.dot(yc, w2_ref[2], preferred_element_type=f32).reshape(bt, l, cpo)

    a2 = _shift_taps(p0, p1, p2, bt, l, cpo)                       # no VMEM scratch

    a2_ref[...] = a2.astype(a2_ref.dtype)

    a2f = a2.reshape(bt * l, cpo)
    st_ref[0, 0:1, :] = jnp.sum(a2f, axis=0, keepdims=True)
    st_ref[0, 1:2, :] = jnp.sum(a2f * a2f, axis=0, keepdims=True)


# ---------------- pass 3: BN2 + recomputed downsample + residual + LeakyReLU -
def _bn2_residual_kernel(a2_ref, x_ref, wd_ref, aff_ref, out_ref):
    # aff_ref: (4, Cpo) [scale2, shift2, scale_d, shift_d] (f32)
    bt, l, cpo = a2_ref.shape
    cpi = x_ref.shape[2]
    f32 = jnp.float32

    # recompute the 1x1 downsample instead of reloading an f32 HBM array
    x = x_ref[...].reshape(bt * l, cpi)
    r = jnp.dot(x, wd_ref[...], preferred_element_type=f32)

    a2 = a2_ref[...].astype(f32).reshape(bt * l, cpo)
    o = (a2 * aff_ref[0:1, :] + aff_ref[1:2, :]
         + r * aff_ref[2:3, :] + aff_ref[3:4, :])
    out_ref[...] = _leaky_relu(o).reshape(bt, l, cpo).astype(out_ref.dtype)


# ---------------- wrapper -----------------------------------------------------
@functools.partial(jax.jit, static_argnames=("compute_dtype",))
def residual_block(x_ncl, params, *, compute_dtype=jnp.bfloat16):
    """x_ncl: (N, C_in, L) float32 (PyTorch NCL). Returns (N, C_out, L) float32.

    compute_dtype controls the MXU operand dtype and the storage dtype of the
    a1/a2 intermediates; accumulation, BN statistics and all elementwise math
    stay f32.  bf16 is the recommended default on v5e/v6e/v7x alike.
    """
    N, Cin, L = x_ncl.shape
    Cout = params["w1"].shape[0]
    Cpi = _round_up(Cin, LANE)
    Cpo = _round_up(Cout, LANE)
    Bt = _pick_bt(N, L, max(Cpi, Cpo))
    T = N // Bt
    count = float(N * L)
    f32 = jnp.float32
    cdt = compute_dtype

    # ---- layout glue: channels-last, lane-padded channels, compute dtype ----
    x_nlc = jnp.transpose(x_ncl, (0, 2, 1))                          # (N, L, Cin)
    xp = jnp.pad(x_nlc, ((0, 0), (0, 0), (0, Cpi - Cin))).astype(cdt)  # (N, L, Cpi)

    # ---- weights: PyTorch (Cout, Cin, K) -> (K, Cin, Cout), lane padded ------
    def pad2(w_io, rpad, cpad):
        return jnp.pad(w_io, ((0, rpad - w_io.shape[0]), (0, cpad - w_io.shape[1])))

    w1 = jnp.transpose(params["w1"], (2, 1, 0))                      # (3, Cin, Cout)
    w2 = jnp.transpose(params["w2"], (2, 1, 0))                      # (3, Cout, Cout)
    wd = jnp.transpose(params["wd"][:, :, 0], (1, 0))                # (Cin, Cout)

    wk0 = pad2(w1[0], Cpi, Cpo).astype(cdt)
    wk2 = pad2(w1[2], Cpi, Cpo).astype(cdt)
    # fuse the 1x1 downsample into conv1's k=1 tap (shared center operand)
    wk1d = jnp.concatenate([pad2(w1[1], Cpi, Cpo), pad2(wd, Cpi, Cpo)],
                           axis=1).astype(cdt)                        # (Cpi, 2*Cpo)
    w2p = jnp.stack([pad2(w2[k], Cpo, Cpo) for k in range(3)]).astype(cdt)
    wdp = pad2(wd, Cpi, Cpo).astype(cdt)

    # NOTE: conv biases b1/b2/bd are dropped on purpose — a per-channel bias
    # added immediately before training-mode BN is cancelled by the batch mean.
    # (Would be wrong for eval-mode / running-stats BN.)

    padc = lambda v: jnp.pad(v.astype(f32), (0, Cpo - Cout))
    g1, be1 = padc(params["g1"]), padc(params["be1"])
    g2, be2 = padc(params["g2"]), padc(params["be2"])
    gd, bed = padc(params["gd"]), padc(params["bed"])

    cparams = pltpu.CompilerParams(dimension_semantics=("parallel",),
                                   vmem_limit_bytes=_vmem_limit_bytes())
    grid = (T,)

    # ---- pass 1: conv1 taps + fused downsample + BN1/BNd partial stats ------
    a1, st1 = pl.pallas_call(
        _conv1_ds_kernel,
        grid=grid,
        in_specs=[pl.BlockSpec((Bt, L, Cpi), lambda t: (t, 0, 0)),
                  pl.BlockSpec((Cpi, Cpo), lambda t: (0, 0)),
                  pl.BlockSpec((Cpi, 2 * Cpo), lambda t: (0, 0)),
                  pl.BlockSpec((Cpi, Cpo), lambda t: (0, 0))],
        out_specs=[pl.BlockSpec((Bt, L, Cpo), lambda t: (t, 0, 0)),
                   pl.BlockSpec((1, 4, Cpo), lambda t: (t, 0, 0))],
        out_shape=[jax.ShapeDtypeStruct((N, L, Cpo), cdt),
                   jax.ShapeDtypeStruct((T, 4, Cpo), f32)],
        compiler_params=cparams,
    )(xp, wk0, wk1d, wk2)

    # ---- tiny cross-tile stat reduce + fold BN into per-channel affine ------
    def bn_affine(s, q, gamma, beta):
        mean = s / count
        var = jnp.maximum(q / count - mean * mean, 0.0)
        scale = gamma * lax.rsqrt(var + EPS)
        return scale, beta - mean * scale

    st1 = jnp.sum(st1, axis=0)                                       # (4, Cpo)
    sc1, sh1 = bn_affine(st1[0], st1[1], g1, be1)
    scd, shd = bn_affine(st1[2], st1[3], gd, bed)
    aff1 = jnp.stack([sc1, sh1])                                     # (2, Cpo)

    # ---- pass 2: BN1 + LeakyReLU + conv2 + BN2 partial stats ----------------
    a2, st2 = pl.pallas_call(
        _bn1_conv2_kernel,
        grid=grid,
        in_specs=[pl.BlockSpec((Bt, L, Cpo), lambda t: (t, 0, 0)),
                  pl.BlockSpec((2, Cpo), lambda t: (0, 0)),
                  pl.BlockSpec((3, Cpo, Cpo), lambda t: (0, 0, 0))],
        out_specs=[pl.BlockSpec((Bt, L, Cpo), lambda t: (t, 0, 0)),
                   pl.BlockSpec((1, 2, Cpo), lambda t: (t, 0, 0))],
        out_shape=[jax.ShapeDtypeStruct((N, L, Cpo), cdt),
                   jax.ShapeDtypeStruct((T, 2, Cpo), f32)],
        compiler_params=cparams,
    )(a1, aff1, w2p)

    st2 = jnp.sum(st2, axis=0)                                       # (2, Cpo)
    sc2, sh2 = bn_affine(st2[0], st2[1], g2, be2)
    aff2d = jnp.stack([sc2, sh2, scd, shd])                          # (4, Cpo)

    # ---- pass 3: normalize + recomputed downsample + residual + LeakyReLU ---
    out_nlc = pl.pallas_call(
        _bn2_residual_kernel,
        grid=grid,
        in_specs=[pl.BlockSpec((Bt, L, Cpo), lambda t: (t, 0, 0)),
                  pl.BlockSpec((Bt, L, Cpi), lambda t: (t, 0, 0)),
                  pl.BlockSpec((Cpi, Cpo), lambda t: (0, 0)),
                  pl.BlockSpec((4, Cpo), lambda t: (0, 0))],
        out_specs=pl.BlockSpec((Bt, L, Cpo), lambda t: (t, 0, 0)),
        out_shape=jax.ShapeDtypeStruct((N, L, Cpo), f32),
        compiler_params=cparams,
    )(a2, xp, wdp, aff2d)

    # unpad channels, back to PyTorch NCL
    return jnp.transpose(out_nlc[:, :, :Cout], (0, 2, 1))


# ---------------- pure-JAX reference (matches PyTorch forward, training BN) --
def reference(x, params):
    def conv1d(x, w, b, padding):
        y = lax.conv_general_dilated(
            x, w, window_strides=(1,), padding=[(padding, padding)],
            dimension_numbers=("NCH", "OIH", "NCH"))
        return y + b[None, :, None]

    def bn(x, g, be):
        mean = jnp.mean(x, axis=(0, 2), keepdims=True)
        var = jnp.mean((x - mean) ** 2, axis=(0, 2), keepdims=True)
        return (x - mean) / jnp.sqrt(var + EPS) * g[None, :, None] + be[None, :, None]

    lrelu = lambda v: jnp.where(v >= 0, v, NEG_SLOPE * v)
    out = lrelu(bn(conv1d(x, params["w1"], params["b1"], 1), params["g1"], params["be1"]))
    out = bn(conv1d(out, params["w2"], params["b2"], 1), params["g2"], params["be2"])
    res = bn(conv1d(x, params["wd"], params["bd"], 0), params["gd"], params["bed"])
    return lrelu(out + res)


def init_params(key, in_channels, out_channels):
    ks = jax.random.split(key, 6)
    return {
        "w1": 0.2 * jax.random.normal(ks[0], (out_channels, in_channels, 3), jnp.float32),
        "b1": 0.1 * jax.random.normal(ks[1], (out_channels,), jnp.float32),
        "g1": jnp.ones((out_channels,), jnp.float32),
        "be1": jnp.zeros((out_channels,), jnp.float32),
        "w2": 0.2 * jax.random.normal(ks[2], (out_channels, out_channels, 3), jnp.float32),
        "b2": 0.1 * jax.random.normal(ks[3], (out_channels,), jnp.float32),
        "g2": jnp.ones((out_channels,), jnp.float32),
        "be2": jnp.zeros((out_channels,), jnp.float32),
        # downsample branch: 1x1 conv + BN (active because in != out channels)
        "wd": 0.2 * jax.random.normal(ks[4], (out_channels, in_channels, 1), jnp.float32),
        "bd": 0.1 * jax.random.normal(ks[5], (out_channels,), jnp.float32),
        "gd": jnp.ones((out_channels,), jnp.float32),
        "bed": jnp.zeros((out_channels,), jnp.float32),
    }


if __name__ == "__main__":
    key = jax.random.PRNGKey(0)
    kx, kp = jax.random.split(key)

    N, C_IN, C_OUT, L = 2, 4, 8, 16
    x = jax.random.normal(kx, (N, C_IN, L), jnp.float32)   # NCL, like PyTorch
    params = init_params(kp, C_IN, C_OUT)

    ref = jax.block_until_ready(reference(x, params))

    # full-f32 path (matmul operands + intermediates in f32)
    out_f32 = jax.block_until_ready(residual_block(x, params, compute_dtype=jnp.float32))
    assert out_f32.shape == (N, C_OUT, L)
    assert jnp.allclose(out_f32, ref, rtol=2e-2, atol=2e-2)

    # bf16 matmul operands + bf16 intermediates, f32 accumulation / BN stats
    out_bf16 = jax.block_until_ready(residual_block(x, params, compute_dtype=jnp.bfloat16))
    assert out_bf16.shape == (N, C_OUT, L)
    assert jnp.allclose(out_bf16, ref, rtol=1e-1, atol=1e-1)

    print("KERNEL_OK")
</pallas_src>

<mosaic_0001>
module attributes {stable_mosaic.version = 11 : i64} {
  func.func @_conv1_ds_kernel(%arg0: i32, %arg1: memref<2x16x128xf32, #tpu.memory_space<vmem>>, %arg2: memref<128x128xf32, #tpu.memory_space<vmem>>, %arg3: memref<128x256xf32, #tpu.memory_space<vmem>>, %arg4: memref<128x128xf32, #tpu.memory_space<vmem>>, %arg5: memref<2x16x128xf32, #tpu.memory_space<vmem>>, %arg6: memref<1x4x128xf32, #tpu.memory_space<vmem>>) attributes {dimension_semantics = [#tpu.dimension_semantics<parallel>], iteration_bounds = array<i64: 1>, scalar_prefetch = 0 : i64, scratch_operands = 0 : i64, tpu.core_type = #tpu.core_type<tc>, window_params = [{transform_indices = @transform_0, window_bounds = array<i64: 2, 16, 128>}, {pipeline_mode = #tpu.pipeline_mode<synchronous>, transform_indices = @transform_1, window_bounds = array<i64: 128, 128>}, {pipeline_mode = #tpu.pipeline_mode<synchronous>, transform_indices = @transform_2, window_bounds = array<i64: 128, 256>}, {pipeline_mode = #tpu.pipeline_mode<synchronous>, transform_indices = @transform_3, window_bounds = array<i64: 128, 128>}, {transform_indices = @transform_4, window_bounds = array<i64: 2, 16, 128>}, {transform_indices = @transform_5, window_bounds = array<i64: 1, 4, 128>}]} {
    %c0 = arith.constant 0 : index
    %c0_0 = arith.constant 0 : index
    %c0_1 = arith.constant 0 : index
    %0 = vector.load %arg1[%c0, %c0_0, %c0_1] : memref<2x16x128xf32, #tpu.memory_space<vmem>>, vector<2x16x128xf32>
    %1 = vector.shape_cast %0 : vector<2x16x128xf32> to vector<32x128xf32>
    %c0_2 = arith.constant 0 : index
    %c0_3 = arith.constant 0 : index
    %2 = vector.load %arg3[%c0_2, %c0_3] : memref<128x256xf32, #tpu.memory_space<vmem>>, vector<128x256xf32>
    %cst = arith.constant dense<0.000000e+00> : vector<32x256xf32>
    %3 = tpu.matmul %1, %2, %cst {dimension_numbers = #tpu.dot_dimension_numbers<[1], [0], [0], [1], [0, 0, 1, 1], [], []>} : vector<32x128xf32>, vector<128x256xf32>, vector<32x256xf32> -> vector<32x256xf32>
    %c0_4 = arith.constant 0 : index
    %c0_5 = arith.constant 0 : index
    %4 = vector.load %arg2[%c0_4, %c0_5] : memref<128x128xf32, #tpu.memory_space<vmem>>, vector<128x128xf32>
    %cst_6 = arith.constant dense<0.000000e+00> : vector<32x128xf32>
    %5 = tpu.matmul %1, %4, %cst_6 {dimension_numbers = #tpu.dot_dimension_numbers<[1], [0], [0], [1], [0, 0, 1, 1], [], []>} : vector<32x128xf32>, vector<128x128xf32>, vector<32x128xf32> -> vector<32x128xf32>
    %c0_7 = arith.constant 0 : index
    %c0_8 = arith.constant 0 : index
    %6 = vector.load %arg4[%c0_7, %c0_8] : memref<128x128xf32, #tpu.memory_space<vmem>>, vector<128x128xf32>
    %cst_9 = arith.constant dense<0.000000e+00> : vector<32x128xf32>
    %7 = tpu.matmul %1, %6, %cst_9 {dimension_numbers = #tpu.dot_dimension_numbers<[1], [0], [0], [1], [0, 0, 1, 1], [], []>} : vector<32x128xf32>, vector<128x128xf32>, vector<32x128xf32> -> vector<32x128xf32>
    %8 = vector.extract_strided_slice %3 {offsets = [0, 0], sizes = [32, 128], strides = [1, 1]} : vector<32x256xf32> to vector<32x128xf32>
    %9 = vector.shape_cast %8 : vector<32x128xf32> to vector<2x16x128xf32>
    %10 = vector.extract_strided_slice %3 {offsets = [0, 128], sizes = [32, 128], strides = [1, 1]} : vector<32x256xf32> to vector<32x128xf32>
    %11 = vector.shape_cast %5 : vector<32x128xf32> to vector<2x16x128xf32>
    %12 = vector.shape_cast %7 : vector<32x128xf32> to vector<2x16x128xf32>
    %cst_10 = arith.constant 0.000000e+00 : f32
    %13 = vector.broadcast %cst_10 : f32 to vector<2x1x128xf32>
    %14 = vector.extract_strided_slice %11 {offsets = [0, 0, 0], sizes = [2, 15, 128], strides = [1, 1, 1]} : vector<2x16x128xf32> to vector<2x15x128xf32>
    %15 = tpu.concatenate %13, %14 in 1 : vector<2x1x128xf32>, vector<2x15x128xf32> -> vector<2x16x128xf32>
    %16 = arith.addf %9, %15 : vector<2x16x128xf32>
    %17 = vector.extract_strided_slice %12 {offsets = [0, 1, 0], sizes = [2, 15, 128], strides = [1, 1, 1]} : vector<2x16x128xf32> to vector<2x15x128xf32>
    %18 = tpu.concatenate %17, %13 in 1 : vector<2x15x128xf32>, vector<2x1x128xf32> -> vector<2x16x128xf32>
    %19 = arith.addf %16, %18 : vector<2x16x128xf32>
    %c0_11 = arith.constant 0 : index
    %c0_12 = arith.constant 0 : index
    %c0_13 = arith.constant 0 : index
    %20 = vector.load %arg5[%c0_11, %c0_12, %c0_13] : memref<2x16x128xf32, #tpu.memory_space<vmem>>, vector<2x16x128xf32>
    tpu.vector_store %arg5[%c0_11, %c0_12, %c0_13], %19 {strides = array<i32>} : memref<2x16x128xf32, #tpu.memory_space<vmem>>, vector<2x16x128xf32>,
    %21 = vector.shape_cast %19 : vector<2x16x128xf32> to vector<32x128xf32>
    %cst_14 = arith.constant dense<0.000000e+00> : vector<128xf32>
    %22 = vector.multi_reduction <add>, %21, %cst_14 [0] : vector<32x128xf32> to vector<128xf32>
    %23 = vector.shape_cast %22 : vector<128xf32> to vector<1x128xf32>
    %c0_15 = arith.constant 0 : index
    %c0_16 = arith.constant 0 : index
    %c0_17 = arith.constant 0 : index
    %24 = vector.load %arg6[%c0_15, %c0_16, %c0_17] : memref<1x4x128xf32, #tpu.memory_space<vmem>>, vector<1x1x128xf32>
    %25 = vector.shape_cast %24 : vector<1x1x128xf32> to vector<1x128xf32>
    %26 = vector.shape_cast %23 : vector<1x128xf32> to vector<1x1x128xf32>
    tpu.vector_store %arg6[%c0_15, %c0_16, %c0_17], %26 {strides = array<i32>} : memref<1x4x128xf32, #tpu.memory_space<vmem>>, vector<1x1x128xf32>,
    %27 = arith.mulf %21, %21 : vector<32x128xf32>
    %cst_18 = arith.constant dense<0.000000e+00> : vector<128xf32>
    %28 = vector.multi_reduction <add>, %27, %cst_18 [0] : vector<32x128xf32> to vector<128xf32>
    %29 = vector.shape_cast %28 : vector<128xf32> to vector<1x128xf32>
    %c0_19 = arith.constant 0 : index
    %c1 = arith.constant 1 : index
    %c0_20 = arith.constant 0 : index
    %30 = vector.load %arg6[%c0_19, %c1, %c0_20] : memref<1x4x128xf32, #tpu.memory_space<vmem>>, vector<1x1x128xf32>
    %31 = vector.shape_cast %30 : vector<1x1x128xf32> to vector<1x128xf32>
    %32 = vector.shape_cast %29 : vector<1x128xf32> to vector<1x1x128xf32>
    tpu.vector_store %arg6[%c0_19, %c1, %c0_20], %32 {strides = array<i32>} : memref<1x4x128xf32, #tpu.memory_space<vmem>>, vector<1x1x128xf32>,
    %cst_21 = arith.constant dense<0.000000e+00> : vector<128xf32>
    %33 = vector.multi_reduction <add>, %10, %cst_21 [0] : vector<32x128xf32> to vector<128xf32>
    %34 = vector.shape_cast %33 : vector<128xf32> to vector<1x128xf32>
    %c0_22 = arith.constant 0 : index
    %c2 = arith.constant 2 : index
    %c0_23 = arith.constant 0 : index
    %35 = vector.load %arg6[%c0_22, %c2, %c0_23] : memref<1x4x128xf32, #tpu.memory_space<vmem>>, vector<1x1x128xf32>
    %36 = vector.shape_cast %35 : vector<1x1x128xf32> to vector<1x128xf32>
    %37 = vector.shape_cast %34 : vector<1x128xf32> to vector<1x1x128xf32>
    tpu.vector_store %arg6[%c0_22, %c2, %c0_23], %37 {strides = array<i32>} : memref<1x4x128xf32, #tpu.memory_space<vmem>>, vector<1x1x128xf32>,
    %38 = arith.mulf %10, %10 : vector<32x128xf32>
    %cst_24 = arith.constant dense<0.000000e+00> : vector<128xf32>
    %39 = vector.multi_reduction <add>, %38, %cst_24 [0] : vector<32x128xf32> to vector<128xf32>
    %40 = vector.shape_cast %39 : vector<128xf32> to vector<1x128xf32>
    %c0_25 = arith.constant 0 : index
    %c3 = arith.constant 3 : index
    %c0_26 = arith.constant 0 : index
    %41 = vector.load %arg6[%c0_25, %c3, %c0_26] : memref<1x4x128xf32, #tpu.memory_space<vmem>>, vector<1x1x128xf32>
    %42 = vector.shape_cast %41 : vector<1x1x128xf32> to vector<1x128xf32>
    %43 = vector.shape_cast %40 : vector<1x128xf32> to vector<1x1x128xf32>
    tpu.vector_store %arg6[%c0_25, %c3, %c0_26], %43 {strides = array<i32>} : memref<1x4x128xf32, #tpu.memory_space<vmem>>, vector<1x1x128xf32>,
    return
  }
  func.func @transform_0(%arg0: i32) -> (i32, i32, i32) {
    %c0_i32 = arith.constant 0 : i32
    %c0_i32_0 = arith.constant 0 : i32
    %c0_i32_1 = arith.constant 0 : i32
    return %arg0, %c0_i32, %c0_i32_0 : i32, i32, i32
  }
  func.func @transform_1(%arg0: i32) -> (i32, i32) {
    %c0_i32 = arith.constant 0 : i32
    %c0_i32_0 = arith.constant 0 : i32
    %c0_i32_1 = arith.constant 0 : i32
    return %c0_i32, %c0_i32_0 : i32, i32
  }
  func.func @transform_2(%arg0: i32) -> (i32, i32) {
    %c0_i32 = arith.constant 0 : i32
    %c0_i32_0 = arith.constant 0 : i32
    %c0_i32_1 = arith.constant 0 : i32
    return %c0_i32, %c0_i32_0 : i32, i32
  }
  func.func @transform_3(%arg0: i32) -> (i32, i32) {
    %c0_i32 = arith.constant 0 : i32
    %c0_i32_0 = arith.constant 0 : i32
    %c0_i32_1 = arith.constant 0 : i32
    return %c0_i32, %c0_i32_0 : i32, i32
  }
  func.func @transform_4(%arg0: i32) -> (i32, i32, i32) {
    %c0_i32 = arith.constant 0 : i32
    %c0_i32_0 = arith.constant 0 : i32
    %c0_i32_1 = arith.constant 0 : i32
    return %arg0, %c0_i32, %c0_i32_0 : i32, i32, i32
  }
  func.func @transform_5(%arg0: i32) -> (i32, i32, i32) {
    %c0_i32 = arith.constant 0 : i32
    %c0_i32_0 = arith.constant 0 : i32
    %c0_i32_1 = arith.constant 0 : i32
    return %arg0, %c0_i32, %c0_i32_0 : i32, i32, i32
  }
}

module attributes {stable_mosaic.version = 11 : i64} {
  func.func @_bn1_conv2_kernel(%arg0: i32, %arg1: memref<2x16x128xf32, #tpu.memory_space<vmem>>, %arg2: memref<2x128xf32, #tpu.memory_space<vmem>>, %arg3: memref<3x128x128xf32, #tpu.memory_space<vmem>>, %arg4: memref<2x16x128xf32, #tpu.memory_space<vmem>>, %arg5: memref<1x2x128xf32, #tpu.memory_space<vmem>>) attributes {dimension_semantics = [#tpu.dimension_semantics<parallel>], iteration_bounds = array<i64: 1>, scalar_prefetch = 0 : i64, scratch_operands = 0 : i64, tpu.core_type = #tpu.core_type<tc>, window_params = [{transform_indices = @transform_0, window_bounds = array<i64: 2, 16, 128>}, {pipeline_mode = #tpu.pipeline_mode<synchronous>, transform_indices = @transform_1, window_bounds = array<i64: 2, 128>}, {pipeline_mode = #tpu.pipeline_mode<synchronous>, transform_indices = @transform_2, window_bounds = array<i64: 3, 128, 128>}, {transform_indices = @transform_3, window_bounds = array<i64: 2, 16, 128>}, {transform_indices = @transform_4, window_bounds = array<i64: 1, 2, 128>}]} {
    %c0 = arith.constant 0 : index
    %c0_0 = arith.constant 0 : index
    %c0_1 = arith.constant 0 : index
    %0 = vector.load %arg1[%c0, %c0_0, %c0_1] : memref<2x16x128xf32, #tpu.memory_space<vmem>>, vector<2x16x128xf32>
    %1 = vector.shape_cast %0 : vector<2x16x128xf32> to vector<32x128xf32>
    %c0_2 = arith.constant 0 : index
    %c0_3 = arith.constant 0 : index
    %2 = vector.load %arg2[%c0_2, %c0_3] : memref<2x128xf32, #tpu.memory_space<vmem>>, vector<1x128xf32>
    %3 = vector.broadcast %2 : vector<1x128xf32> to vector<32x128xf32>
    %4 = arith.mulf %1, %3 : vector<32x128xf32>
    %c1 = arith.constant 1 : index
    %c0_4 = arith.constant 0 : index
    %5 = vector.load %arg2[%c1, %c0_4] : memref<2x128xf32, #tpu.memory_space<vmem>>, vector<1x128xf32>
    %6 = vector.broadcast %5 : vector<1x128xf32> to vector<32x128xf32>
    %7 = arith.addf %4, %6 : vector<32x128xf32>
    %cst = arith.constant 0.000000e+00 : f32
    %8 = vector.broadcast %cst : f32 to vector<32x128xf32>
    %9 = arith.cmpf oge, %7, %8 : vector<32x128xf32>
    %cst_5 = arith.constant 0.00999999977 : f32
    %10 = vector.broadcast %cst_5 : f32 to vector<32x128xf32>
    %11 = arith.mulf %10, %7 : vector<32x128xf32>
    %12 = arith.select %9, %7, %11 : vector<32x128xi1>, vector<32x128xf32>
    %c0_6 = arith.constant 0 : index
    %c0_7 = arith.constant 0 : index
    %c0_8 = arith.constant 0 : index
    %13 = vector.load %arg3[%c0_6, %c0_7, %c0_8] : memref<3x128x128xf32, #tpu.memory_space<vmem>>, vector<1x128x128xf32>
    %14 = vector.shape_cast %13 : vector<1x128x128xf32> to vector<128x128xf32>
    %cst_9 = arith.constant dense<0.000000e+00> : vector<32x128xf32>
    %15 = tpu.matmul %12, %14, %cst_9 {dimension_numbers = #tpu.dot_dimension_numbers<[1], [0], [0], [1], [0, 0, 1, 1], [], []>} : vector<32x128xf32>, vector<128x128xf32>, vector<32x128xf32> -> vector<32x128xf32>
    %16 = vector.shape_cast %15 : vector<32x128xf32> to vector<2x16x128xf32>
    %c1_10 = arith.constant 1 : index
    %c0_11 = arith.constant 0 : index
    %c0_12 = arith.constant 0 : index
    %17 = vector.load %arg3[%c1_10, %c0_11, %c0_12] : memref<3x128x128xf32, #tpu.memory_space<vmem>>, vector<1x128x128xf32>
    %18 = vector.shape_cast %17 : vector<1x128x128xf32> to vector<128x128xf32>
    %cst_13 = arith.constant dense<0.000000e+00> : vector<32x128xf32>
    %19 = tpu.matmul %12, %18, %cst_13 {dimension_numbers = #tpu.dot_dimension_numbers<[1], [0], [0], [1], [0, 0, 1, 1], [], []>} : vector<32x128xf32>, vector<128x128xf32>, vector<32x128xf32> -> vector<32x128xf32>
    %20 = vector.shape_cast %19 : vector<32x128xf32> to vector<2x16x128xf32>
    %c2 = arith.constant 2 : index
    %c0_14 = arith.constant 0 : index
    %c0_15 = arith.constant 0 : index
    %21 = vector.load %arg3[%c2, %c0_14, %c0_15] : memref<3x128x128xf32, #tpu.memory_space<vmem>>, vector<1x128x128xf32>
    %22 = vector.shape_cast %21 : vector<1x128x128xf32> to vector<128x128xf32>
    %cst_16 = arith.constant dense<0.000000e+00> : vector<32x128xf32>
    %23 = tpu.matmul %12, %22, %cst_16 {dimension_numbers = #tpu.dot_dimension_numbers<[1], [0], [0], [1], [0, 0, 1, 1], [], []>} : vector<32x128xf32>, vector<128x128xf32>, vector<32x128xf32> -> vector<32x128xf32>
    %24 = vector.shape_cast %23 : vector<32x128xf32> to vector<2x16x128xf32>
    %cst_17 = arith.constant 0.000000e+00 : f32
    %25 = vector.broadcast %cst_17 : f32 to vector<2x1x128xf32>
    %26 = vector.extract_strided_slice %16 {offsets = [0, 0, 0], sizes = [2, 15, 128], strides = [1, 1, 1]} : vector<2x16x128xf32> to vector<2x15x128xf32>
    %27 = tpu.concatenate %25, %26 in 1 : vector<2x1x128xf32>, vector<2x15x128xf32> -> vector<2x16x128xf32>
    %28 = arith.addf %20, %27 : vector<2x16x128xf32>
    %29 = vector.extract_strided_slice %24 {offsets = [0, 1, 0], sizes = [2, 15, 128], strides = [1, 1, 1]} : vector<2x16x128xf32> to vector<2x15x128xf32>
    %30 = tpu.concatenate %29, %25 in 1 : vector<2x15x128xf32>, vector<2x1x128xf32> -> vector<2x16x128xf32>
    %31 = arith.addf %28, %30 : vector<2x16x128xf32>
    %c0_18 = arith.constant 0 : index
    %c0_19 = arith.constant 0 : index
    %c0_20 = arith.constant 0 : index
    %32 = vector.load %arg4[%c0_18, %c0_19, %c0_20] : memref<2x16x128xf32, #tpu.memory_space<vmem>>, vector<2x16x128xf32>
    tpu.vector_store %arg4[%c0_18, %c0_19, %c0_20], %31 {strides = array<i32>} : memref<2x16x128xf32, #tpu.memory_space<vmem>>, vector<2x16x128xf32>,
    %33 = vector.shape_cast %31 : vector<2x16x128xf32> to vector<32x128xf32>
    %cst_21 = arith.constant dense<0.000000e+00> : vector<128xf32>
    %34 = vector.multi_reduction <add>, %33, %cst_21 [0] : vector<32x128xf32> to vector<128xf32>
    %35 = vector.shape_cast %34 : vector<128xf32> to vector<1x128xf32>
    %c0_22 = arith.constant 0 : index
    %c0_23 = arith.constant 0 : index
    %c0_24 = arith.constant 0 : index
    %36 = vector.load %arg5[%c0_22, %c0_23, %c0_24] : memref<1x2x128xf32, #tpu.memory_space<vmem>>, vector<1x1x128xf32>
    %37 = vector.shape_cast %36 : vector<1x1x128xf32> to vector<1x128xf32>
    %38 = vector.shape_cast %35 : vector<1x128xf32> to vector<1x1x128xf32>
    tpu.vector_store %arg5[%c0_22, %c0_23, %c0_24], %38 {strides = array<i32>} : memref<1x2x128xf32, #tpu.memory_space<vmem>>, vector<1x1x128xf32>,
    %39 = arith.mulf %33, %33 : vector<32x128xf32>
    %cst_25 = arith.constant dense<0.000000e+00> : vector<128xf32>
    %40 = vector.multi_reduction <add>, %39, %cst_25 [0] : vector<32x128xf32> to vector<128xf32>
    %41 = vector.shape_cast %40 : vector<128xf32> to vector<1x128xf32>
    %c0_26 = arith.constant 0 : index
    %c1_27 = arith.constant 1 : index
    %c0_28 = arith.constant 0 : index
    %42 = vector.load %arg5[%c0_26, %c1_27, %c0_28] : memref<1x2x128xf32, #tpu.memory_space<vmem>>, vector<1x1x128xf32>
    %43 = vector.shape_cast %42 : vector<1x1x128xf32> to vector<1x128xf32>
    %44 = vector.shape_cast %41 : vector<1x128xf32> to vector<1x1x128xf32>
    tpu.vector_store %arg5[%c0_26, %c1_27, %c0_28], %44 {strides = array<i32>} : memref<1x2x128xf32, #tpu.memory_space<vmem>>, vector<1x1x128xf32>,
    return
  }
  func.func @transform_0(%arg0: i32) -> (i32, i32, i32) {
    %c0_i32 = arith.constant 0 : i32
    %c0_i32_0 = arith.constant 0 : i32
    %c0_i32_1 = arith.constant 0 : i32
    return %arg0, %c0_i32, %c0_i32_0 : i32, i32, i32
  }
  func.func @transform_1(%arg0: i32) -> (i32, i32) {
    %c0_i32 = arith.constant 0 : i32
    %c0_i32_0 = arith.constant 0 : i32
    %c0_i32_1 = arith.constant 0 : i32
    return %c0_i32, %c0_i32_0 : i32, i32
  }
  func.func @transform_2(%arg0: i32) -> (i32, i32, i32) {
    %c0_i32 = arith.constant 0 : i32
    %c0_i32_0 = arith.constant 0 : i32
    %c0_i32_1 = arith.constant 0 : i32
    %c0_i32_2 = arith.constant 0 : i32
    return %c0_i32, %c0_i32_0, %c0_i32_1 : i32, i32, i32
  }
  func.func @transform_3(%arg0: i32) -> (i32, i32, i32) {
    %c0_i32 = arith.constant 0 : i32
    %c0_i32_0 = arith.constant 0 : i32
    %c0_i32_1 = arith.constant 0 : i32
    return %arg0, %c0_i32, %c0_i32_0 : i32, i32, i32
  }
  func.func @transform_4(%arg0: i32) -> (i32, i32, i32) {
    %c0_i32 = arith.constant 0 : i32
    %c0_i32_0 = arith.constant 0 : i32
    %c0_i32_1 = arith.constant 0 : i32
    return %arg0, %c0_i32, %c0_i32_0 : i32, i32, i32
  }
}

module attributes {stable_mosaic.version = 11 : i64} {
  func.func @_bn2_residual_kernel(%arg0: i32, %arg1: memref<2x16x128xf32, #tpu.memory_space<vmem>>, %arg2: memref<2x16x128xf32, #tpu.memory_space<vmem>>, %arg3: memref<128x128xf32, #tpu.memory_space<vmem>>, %arg4: memref<4x128xf32, #tpu.memory_space<vmem>>, %arg5: memref<2x16x128xf32, #tpu.memory_space<vmem>>) attributes {dimension_semantics = [#tpu.dimension_semantics<parallel>], iteration_bounds = array<i64: 1>, scalar_prefetch = 0 : i64, scratch_operands = 0 : i64, tpu.core_type = #tpu.core_type<tc>, window_params = [{transform_indices = @transform_0, window_bounds = array<i64: 2, 16, 128>}, {transform_indices = @transform_1, window_bounds = array<i64: 2, 16, 128>}, {pipeline_mode = #tpu.pipeline_mode<synchronous>, transform_indices = @transform_2, window_bounds = array<i64: 128, 128>}, {pipeline_mode = #tpu.pipeline_mode<synchronous>, transform_indices = @transform_3, window_bounds = array<i64: 4, 128>}, {transform_indices = @transform_4, window_bounds = array<i64: 2, 16, 128>}]} {
    %c0 = arith.constant 0 : index
    %c0_0 = arith.constant 0 : index
    %c0_1 = arith.constant 0 : index
    %0 = vector.load %arg2[%c0, %c0_0, %c0_1] : memref<2x16x128xf32, #tpu.memory_space<vmem>>, vector<2x16x128xf32>
    %1 = vector.shape_cast %0 : vector<2x16x128xf32> to vector<32x128xf32>
    %c0_2 = arith.constant 0 : index
    %c0_3 = arith.constant 0 : index
    %2 = vector.load %arg3[%c0_2, %c0_3] : memref<128x128xf32, #tpu.memory_space<vmem>>, vector<128x128xf32>
    %cst = arith.constant dense<0.000000e+00> : vector<32x128xf32>
    %3 = tpu.matmul %1, %2, %cst {dimension_numbers = #tpu.dot_dimension_numbers<[1], [0], [0], [1], [0, 0, 1, 1], [], []>} : vector<32x128xf32>, vector<128x128xf32>, vector<32x128xf32> -> vector<32x128xf32>
    %c0_4 = arith.constant 0 : index
    %c0_5 = arith.constant 0 : index
    %c0_6 = arith.constant 0 : index
    %4 = vector.load %arg1[%c0_4, %c0_5, %c0_6] : memref<2x16x128xf32, #tpu.memory_space<vmem>>, vector<2x16x128xf32>
    %5 = vector.shape_cast %4 : vector<2x16x128xf32> to vector<32x128xf32>
    %c0_7 = arith.constant 0 : index
    %c0_8 = arith.constant 0 : index
    %6 = vector.load %arg4[%c0_7, %c0_8] : memref<4x128xf32, #tpu.memory_space<vmem>>, vector<1x128xf32>
    %7 = vector.broadcast %6 : vector<1x128xf32> to vector<32x128xf32>
    %8 = arith.mulf %5, %7 : vector<32x128xf32>
    %c1 = arith.constant 1 : index
    %c0_9 = arith.constant 0 : index
    %9 = vector.load %arg4[%c1, %c0_9] : memref<4x128xf32, #tpu.memory_space<vmem>>, vector<1x128xf32>
    %10 = vector.broadcast %9 : vector<1x128xf32> to vector<32x128xf32>
    %11 = arith.addf %8, %10 : vector<32x128xf32>
    %c2 = arith.constant 2 : index
    %c0_10 = arith.constant 0 : index
    %12 = vector.load %arg4[%c2, %c0_10] : memref<4x128xf32, #tpu.memory_space<vmem>>, vector<1x128xf32>
    %13 = vector.broadcast %12 : vector<1x128xf32> to vector<32x128xf32>
    %14 = arith.mulf %3, %13 : vector<32x128xf32>
    %15 = arith.addf %11, %14 : vector<32x128xf32>
    %c3 = arith.constant 3 : index
    %c0_11 = arith.constant 0 : index
    %16 = vector.load %arg4[%c3, %c0_11] : memref<4x128xf32, #tpu.memory_space<vmem>>, vector<1x128xf32>
    %17 = vector.broadcast %16 : vector<1x128xf32> to vector<32x128xf32>
    %18 = arith.addf %15, %17 : vector<32x128xf32>
    %cst_12 = arith.constant 0.000000e+00 : f32
    %19 = vector.broadcast %cst_12 : f32 to vector<32x128xf32>
    %20 = arith.cmpf oge, %18, %19 : vector<32x128xf32>
    %cst_13 = arith.constant 0.00999999977 : f32
    %21 = vector.broadcast %cst_13 : f32 to vector<32x128xf32>
    %22 = arith.mulf %21, %18 : vector<32x128xf32>
    %23 = arith.select %20, %18, %22 : vector<32x128xi1>, vector<32x128xf32>
    %24 = vector.shape_cast %23 : vector<32x128xf32> to vector<2x16x128xf32>
    %c0_14 = arith.constant 0 : index
    %c0_15 = arith.constant 0 : index
    %c0_16 = arith.constant 0 : index
    %25 = vector.load %arg5[%c0_14, %c0_15, %c0_16] : memref<2x16x128xf32, #tpu.memory_space<vmem>>, vector<2x16x128xf32>
    tpu.vector_store %arg5[%c0_14, %c0_15, %c0_16], %24 {strides = array<i32>} : memref<2x16x128xf32, #tpu.memory_space<vmem>>, vector<2x16x128xf32>,
    return
  }
  func.func @transform_0(%arg0: i32) -> (i32, i32, i32) {
    %c0_i32 = arith.constant 0 : i32
    %c0_i32_0 = arith.constant 0 : i32
    %c0_i32_1 = arith.constant 0 : i32
    return %arg0, %c0_i32, %c0_i32_0 : i32, i32, i32
  }
  func.func @transform_1(%arg0: i32) -> (i32, i32, i32) {
    %c0_i32 = arith.constant 0 : i32
    %c0_i32_0 = arith.constant 0 : i32
    %c0_i32_1 = arith.constant 0 : i32
    return %arg0, %c0_i32, %c0_i32_0 : i32, i32, i32
  }
  func.func @transform_2(%arg0: i32) -> (i32, i32) {
    %c0_i32 = arith.constant 0 : i32
    %c0_i32_0 = arith.constant 0 : i32
    %c0_i32_1 = arith.constant 0 : i32
    return %c0_i32, %c0_i32_0 : i32, i32
  }
  func.func @transform_3(%arg0: i32) -> (i32, i32) {
    %c0_i32 = arith.constant 0 : i32
    %c0_i32_0 = arith.constant 0 : i32
    %c0_i32_1 = arith.constant 0 : i32
    return %c0_i32, %c0_i32_0 : i32, i32
  }
  func.func @transform_4(%arg0: i32) -> (i32, i32, i32) {
    %c0_i32 = arith.constant 0 : i32
    %c0_i32_0 = arith.constant 0 : i32
    %c0_i32_1 = arith.constant 0 : i32
    return %arg0, %c0_i32, %c0_i32_0 : i32, i32, i32
  }
}

</mosaic_0001>

<bundles_post_ra>
// kernel: residual_block.5
= control target key start
LH: loop header
LB: loop body
LE: loop exit
PB: predicated region body
PF: predicated region fallthrough
CT: control target
= control target key end

     0   :  { %s401_s2 = inlined_call_operand.vmem [shape: f32[128,128], index: 2, kind: input, shape index: {}]   ;;  %s402_s1 = inlined_call_operand.vmem [shape: f32[2,16,128], index: 1, kind: input, shape index: {}]   ;;  %s403_s0 = inlined_call_operand.vmem [shape: f32[2,16,128], index: 0, kind: input, shape index: {}]   ;;  %s404_s3 = inlined_call_operand.vmem [shape: f32[4,128], index: 3, kind: input, shape index: {}]   ;;  %s405_s4 = inlined_call_operand.vmem [shape: f32[2,16,128], index: 4, kind: output, shape index: {}]  }
   0x1   :  { %v36_v0 = vld [vmem:[%s401_s2 + $0x78] sm:$0xff]  ;;  %v35_v1 = vld [vmem:[%s401_s2 + $0x70] sm:$0xff]  ;;  %v34_v2 = vld [vmem:[%s401_s2 + $0x68] sm:$0xff] }
   0x2   :  { %210 = vmatprep.subr.mxu0 %v36_v0  ;;  %248 = vmatprep.subr.mxu1 %v36_v0  ;;  %v33_v3 = vld [vmem:[%s401_s2 + $0x60] sm:$0xff]  ;;  %v32_v4 = vld [vmem:[%s401_s2 + $0x58] sm:$0xff]  ;;  %v31_v5 = vld [vmem:[%s401_s2 + $0x50] sm:$0xff] }
   0x3   :  { %211 = vmatpush3.msra.mxu0 %v36_v0  ;;  %264 = vmatpush3.msra.mxu1 %v36_v0  ;;  %v30_v6 = vld [vmem:[%s401_s2 + $0x48] sm:$0xff]  ;;  %v29_v7 = vld [vmem:[%s401_s2 + $0x40] sm:$0xff]  ;;  %v28_v8 = vld [vmem:[%s401_s2 + $0x38] sm:$0xff] }
   0x4   :  { %212 = vmatprep.subr.mxu0 %v35_v1  ;;  %249 = vmatprep.subr.mxu1 %v35_v1  ;;  %v27_v9 = vld [vmem:[%s401_s2 + $0x30] sm:$0xff]  ;;  %v26_v10 = vld [vmem:[%s401_s2 + $0x28] sm:$0xff]  ;;  %v25_v11 = vld [vmem:[%s401_s2 + $0x20] sm:$0xff] }
   0x5   :  { %213 = vmatpush3.msra.mxu0 %v35_v1  ;;  %265 = vmatpush3.msra.mxu1 %v35_v1  ;;  %v24_v12 = vld [vmem:[%s401_s2 + $0x18] sm:$0xff]  ;;  %v23_v13 = vld [vmem:[%s401_s2 + $0x10] sm:$0xff]  ;;  %v22_v14 = vld [vmem:[%s401_s2 + $0x8] sm:$0xff] }
   0x6   :  { %214 = vmatprep.subr.mxu0 %v34_v2  ;;  %250 = vmatprep.subr.mxu1 %v34_v2  ;;  %v21_v15 = vld [vmem:[%s401_s2] sm:$0xff]  ;;  %v19_v17 = vld [vmem:[%s402_s1 + $0x10] sm:$0xff]  ;;  %v18_v18 = vld [vmem:[%s402_s1 + $0x8] sm:$0xff] }
   0x7   :  { %215 = vmatpush3.msra.mxu0 %v34_v2  ;;  %266 = vmatpush3.msra.mxu1 %v34_v2  ;;  %v17_v16 = vld [vmem:[%s402_s1] sm:$0xff]  ;;  %v20_v19 = vld [vmem:[%s402_s1 + $0x18] sm:$0xff]  ;;  %v123_v20 = vld [vmem:[%s403_s0 + $0x8] sm:$0xff] }
   0x8   :  { %216 = vmatprep.subr.mxu0 %v33_v3  ;;  %251 = vmatprep.subr.mxu1 %v33_v3  ;;  %v186_v21 = vld [vmem:[%s404_s3] ss:$0 sm:$0xff]  ;;  %v125_v22 = vld [vmem:[%s403_s0 + $0x18] sm:$0xff]  ;;  %v124_v24 = vld [vmem:[%s403_s0 + $0x10] sm:$0xff] }
   0x9   :  { %217 = vmatpush3.msra.mxu0 %v33_v3  ;;  %267 = vmatpush3.msra.mxu1 %v33_v3  ;;  %v122_v23 = vld [vmem:[%s403_s0] sm:$0xff]  ;;  %v132_v25 = vmul.f32 %v186_v21, %v123_v20  ;;  %v134_v26 = vmul.f32 %v186_v21, %v125_v22  ;;  %v133_v29 = vmul.f32 %v186_v21, %v124_v24 }
   0xa   :  { %218 = vmatprep.subr.mxu0 %v32_v4  ;;  %252 = vmatprep.subr.mxu1 %v32_v4  ;;  %v187_v27 = vld [vmem:[%s404_s3 + $0x1] ss:$0 sm:$0xff]  ;;  %v131_v28 = vmul.f32 %v186_v21, %v122_v23  ;;  %v188_v30 = vld [vmem:[%s404_s3 + $0x2] ss:$0 sm:$0xff]  ;;  %v189_v39 = vld [vmem:[%s404_s3 + $0x3] ss:$0 sm:$0xff] }
   0xb   :  { %219 = vmatpush3.msra.mxu0 %v32_v4  ;;  %268 = vmatpush3.msra.mxu1 %v32_v4  ;;  %v141_v31 = vadd.f32 %v187_v27, %v132_v25  ;;  %v143_v32 = vadd.f32 %v187_v27, %v134_v26  ;;  %v142_v38 = vadd.f32 %v187_v27, %v133_v29 }
   0xc   :  { %220 = vmatprep.subr.mxu0 %v31_v5  ;;  %253 = vmatprep.subr.mxu1 %v31_v5  ;;  %v140_v37 = vadd.f32 %v187_v27, %v131_v28 }
   0xd   :  { %221 = vmatpush3.msra.mxu0 %v31_v5  ;;  %269 = vmatpush3.msra.mxu1 %v31_v5 }
   0xe   :  { %222 = vmatprep.subr.mxu0 %v30_v6  ;;  %254 = vmatprep.subr.mxu1 %v30_v6 }
   0xf   :  { %223 = vmatpush3.msra.mxu0 %v30_v6  ;;  %270 = vmatpush3.msra.mxu1 %v30_v6 }
  0x10   :  { %224 = vmatprep.subr.mxu0 %v29_v7  ;;  %255 = vmatprep.subr.mxu1 %v29_v7 }
  0x11   :  { %225 = vmatpush3.msra.mxu0 %v29_v7  ;;  %271 = vmatpush3.msra.mxu1 %v29_v7 }
  0x12   :  { %226 = vmatprep.subr.mxu0 %v28_v8  ;;  %256 = vmatprep.subr.mxu1 %v28_v8 }
  0x13   :  { %227 = vmatpush3.msra.mxu0 %v28_v8  ;;  %272 = vmatpush3.msra.mxu1 %v28_v8 }
  0x14   :  { %228 = vmatprep.subr.mxu0 %v27_v9  ;;  %257 = vmatprep.subr.mxu1 %v27_v9 }
  0x15   :  { %229 = vmatpush3.msra.mxu0 %v27_v9  ;;  %273 = vmatpush3.msra.mxu1 %v27_v9 }
  0x16   :  { %230 = vmatprep.subr.mxu0 %v26_v10  ;;  %258 = vmatprep.subr.mxu1 %v26_v10 }
  0x17   :  { %231 = vmatpush3.msra.mxu0 %v26_v10  ;;  %274 = vmatpush3.msra.mxu1 %v26_v10 }
  0x18   :  { %232 = vmatprep.subr.mxu0 %v25_v11  ;;  %259 = vmatprep.subr.mxu1 %v25_v11 }
  0x19   :  { %233 = vmatpush3.msra.mxu0 %v25_v11  ;;  %275 = vmatpush3.msra.mxu1 %v25_v11 }
  0x1a   :  { %234 = vmatprep.subr.mxu0 %v24_v12  ;;  %260 = vmatprep.subr.mxu1 %v24_v12 }
  0x1b   :  { %235 = vmatpush3.msra.mxu0 %v24_v12  ;;  %276 = vmatpush3.msra.mxu1 %v24_v12 }
  0x1c   :  { %236 = vmatprep.subr.mxu0 %v23_v13  ;;  %261 = vmatprep.subr.mxu1 %v23_v13 }
  0x1d   :  { %237 = vmatpush3.msra.mxu0 %v23_v13  ;;  %277 = vmatpush3.msra.mxu1 %v23_v13 }
  0x1e   :  { %238 = vmatprep.subr.mxu0 %v22_v14  ;;  %262 = vmatprep.subr.mxu1 %v22_v14 }
  0x1f   :  { %239 = vmatpush3.msra.mxu0 %v22_v14  ;;  %278 = vmatpush3.msra.mxu1 %v22_v14 }
  0x20   :  { %240 = vmatprep.subr.mxu0 %v21_v15  ;;  %263 = vmatprep.subr.mxu1 %v21_v15 }
  0x21   :  { %241 = vmatpush3.msra.mxu0 %v21_v15  ;;  %279 = vmatpush3.msra.mxu1 %v21_v15 }
  0x22   :  { %242 = vmatprep.mubr.f32.mxu0 %v17_v16  ;;  %245 = vmatprep.mubr.f32.mxu1 %v19_v17 }
  0x23   :  { %243 = vmatmul.mubr.f32.vlgmr.msra.gmra.mxu0 %v18_v18  ;;  %246 = vmatmul.mubr.f32.vlgmr.msra.gmra.mxu1 %v20_v19 }
  0xe3   :  { %v244_v33 = vpop.f32.mrf.mxu0  ;;  %v247_v34 = vpop.f32.mrf.mxu1 }
  0xe4   :  { %v150_v35 = vmul.f32 %v244_v33, %v188_v30  ;;  %v152_v36 = vmul.f32 %v247_v34, %v188_v30 }
  0xe5   :  { %v103_v40 = vpop.f32.mrf.mxu0  ;;  %v113_v41 = vpop.f32.mrf.mxu1 }
  0xe6   :  { %v154_v42 = vadd.f32 %v150_v35, %v141_v31  ;;  %v156_v43 = vadd.f32 %v152_v36, %v143_v32  ;;  %v149_v44 = vmul.f32 %v188_v30, %v103_v40  ;;  %v151_v45 = vmul.f32 %v188_v30, %v113_v41 }
  0xe8   :  { %v163_v46 = vadd.f32 %v189_v39, %v154_v42  ;;  %v165_v47 = vadd.f32 %v189_v39, %v156_v43  ;;  %v153_v48 = vadd.f32 %v149_v44, %v140_v37  ;;  %v155_v49 = vadd.f32 %v151_v45, %v142_v38 }
  0xea   :  { %vm167_vm0 = vcmp.ge.f32.partialorder %v163_v46, 0.0  ;;  %v171_v50 = vmul.f32 0.01, %v163_v46  ;;  %vm169_vm1 = vcmp.ge.f32.partialorder %v165_v47, 0.0  ;;  %v173_v51 = vmul.f32 0.01, %v165_v47 }
  0xeb   :  { %v162_v52 = vadd.f32 %v189_v39, %v153_v48  ;;  %v164_v53 = vadd.f32 %v189_v39, %v155_v49 }
  0xec   :  { %v175_v54 = vsel %vm167_vm0, %v163_v46, %v171_v50  ;;  %v177_v55 = vsel %vm169_vm1, %v165_v47, %v173_v51 }
  0xed   :  { %179 = vst [vmem:[%s405_s4 + $0x8] sm:$0xff] %v175_v54  ;;  %181 = vst [vmem:[%s405_s4 + $0x18] sm:$0xff] %v177_v55  ;;  %vm166_vm2 = vcmp.ge.f32.partialorder %v162_v52, 0.0  ;;  %v170_v56 = vmul.f32 0.01, %v162_v52  ;;  %vm168_vm3 = vcmp.ge.f32.partialorder %v164_v53, 0.0 }
  0xee   :  { %v172_v57 = vmul.f32 0.01, %v164_v53 }
  0xef   :  { %v174_v58 = vsel %vm166_vm2, %v162_v52, %v170_v56 }
  0xf0   :  { %v176_v59 = vsel %vm168_vm3, %v164_v53, %v172_v57  ;;  %178 = vst [vmem:[%s405_s4] sm:$0xff] %v174_v58 }
  0xf1   :  { %180 = vst [vmem:[%s405_s4 + $0x10] sm:$0xff] %v176_v59 }

// kernel: residual_block.4
= control target key start
LH: loop header
LB: loop body
LE: loop exit
PB: predicated region body
PF: predicated region fallthrough
CT: control target
= control target key end

     0   :  { %vm359_vm4 = vcmask 1040384   ;;  %vm380_vm5 = vcmask 1046528   ;;  %s904_s2 = inlined_call_operand.vmem [shape: f32[3,128,128], index: 2, kind: input, shape index: {}]   ;;  %s905_s0 = inlined_call_operand.vmem [shape: f32[2,16,128], index: 0, kind: input, shape index: {}]   ;;  %s906_s1 = inlined_call_operand.vmem [shape: f32[2,128], index: 1, kind: input, shape index: {}]   ;;  %s907_s3 = inlined_call_operand.vmem [shape: f32[2,16,128], index: 3, kind: output, shape index: {0}]   ;;  %s908_s4 = inlined_call_operand.vmem [shape: f32[1,2,128], index: 4, kind: output, shape index: {1}]  }
   0x1   :  { %v65_v0 = vld [vmem:[%s904_s2 + $0x78] sm:$0xff]  ;;  %v64_v2 = vld [vmem:[%s904_s2 + $0x70] sm:$0xff]  ;;  %v63_v4 = vld [vmem:[%s904_s2 + $0x68] sm:$0xff] }
   0x2   :  { %v450_v1 = vld [vmem:[%s904_s2 + $0xf8] sm:$0xff]  ;;  %527 = vmatprep.subr.mxu0 %v65_v0  ;;  %v449_v3 = vld [vmem:[%s904_s2 + $0xf0] sm:$0xff]  ;;  %v448_v5 = vld [vmem:[%s904_s2 + $0xe8] sm:$0xff] }
   0x3   :  { %565 = vmatprep.subr.mxu1 %v450_v1  ;;  %528 = vmatpush3.msra.mxu0 %v65_v0  ;;  %v62_v6 = vld [vmem:[%s904_s2 + $0x60] sm:$0xff]  ;;  %v61_v8 = vld [vmem:[%s904_s2 + $0x58] sm:$0xff]  ;;  %v60_v10 = vld [vmem:[%s904_s2 + $0x50] sm:$0xff] }
   0x4   :  { %566 = vmatpush3.msra.mxu1 %v450_v1  ;;  %529 = vmatprep.subr.mxu0 %v64_v2  ;;  %v447_v7 = vld [vmem:[%s904_s2 + $0xe0] sm:$0xff]  ;;  %v446_v9 = vld [vmem:[%s904_s2 + $0xd8] sm:$0xff]  ;;  %v445_v11 = vld [vmem:[%s904_s2 + $0xd0] sm:$0xff] }
   0x5   :  { %567 = vmatprep.subr.mxu1 %v449_v3  ;;  %530 = vmatpush3.msra.mxu0 %v64_v2  ;;  %v59_v12 = vld [vmem:[%s904_s2 + $0x48] sm:$0xff]  ;;  %v58_v14 = vld [vmem:[%s904_s2 + $0x40] sm:$0xff]  ;;  %v57_v16 = vld [vmem:[%s904_s2 + $0x38] sm:$0xff] }
   0x6   :  { %568 = vmatpush3.msra.mxu1 %v449_v3  ;;  %531 = vmatprep.subr.mxu0 %v63_v4  ;;  %v444_v13 = vld [vmem:[%s904_s2 + $0xc8] sm:$0xff]  ;;  %v443_v15 = vld [vmem:[%s904_s2 + $0xc0] sm:$0xff]  ;;  %v442_v17 = vld [vmem:[%s904_s2 + $0xb8] sm:$0xff] }
   0x7   :  { %569 = vmatprep.subr.mxu1 %v448_v5  ;;  %532 = vmatpush3.msra.mxu0 %v63_v4  ;;  %v16_v18 = vld [vmem:[%s905_s0] sm:$0xff]  ;;  %v17_v20 = vld [vmem:[%s905_s0 + $0x8] sm:$0xff]  ;;  %v56_v21 = vld [vmem:[%s904_s2 + $0x30] sm:$0xff] }
   0x8   :  { %570 = vmatpush3.msra.mxu1 %v448_v5  ;;  %533 = vmatprep.subr.mxu0 %v62_v6  ;;  %v758_v19 = vld [vmem:[%s906_s1] ss:$0 sm:$0xff]  ;;  %v441_v22 = vld [vmem:[%s904_s2 + $0xb0] sm:$0xff]  ;;  %v55_v24 = vld [vmem:[%s904_s2 + $0x28] sm:$0xff] }
   0x9   :  { %571 = vmatprep.subr.mxu1 %v447_v7  ;;  %534 = vmatpush3.msra.mxu0 %v62_v6  ;;  %v25_v23 = vmul.f32 %v758_v19, %v16_v18  ;;  %v440_v25 = vld [vmem:[%s904_s2 + $0xa8] sm:$0xff]  ;;  %v779_v26 = vld [vmem:[%s906_s1 + $0x1] ss:$0 sm:$0xff]  ;;  %v26_v27 = vmul.f32 %v758_v19, %v17_v20  ;;  %v53_v31 = vld [vmem:[%s904_s2 + $0x18] sm:$0xff] }
   0xa   :  { %572 = vmatpush3.msra.mxu1 %v447_v7  ;;  %535 = vmatprep.subr.mxu0 %v61_v8  ;;  %v54_v28 = vld [vmem:[%s904_s2 + $0x20] sm:$0xff]  ;;  %v438_v32 = vld [vmem:[%s904_s2 + $0x98] sm:$0xff]  ;;  %v52_v34 = vld [vmem:[%s904_s2 + $0x10] sm:$0xff] }
   0xb   :  { %573 = vmatprep.subr.mxu1 %v446_v9  ;;  %536 = vmatpush3.msra.mxu0 %v61_v8  ;;  %v439_v29 = vld [vmem:[%s904_s2 + $0xa0] sm:$0xff]  ;;  %v34_v30 = vadd.f32 %v779_v26, %v25_v23  ;;  %v35_v33 = vadd.f32 %v779_v26, %v26_v27  ;;  %v437_v35 = vld [vmem:[%s904_s2 + $0x90] sm:$0xff]  ;;  %v51_v37 = vld [vmem:[%s904_s2 + $0x8] sm:$0xff] }
   0xc   :  { %574 = vmatpush3.msra.mxu1 %v446_v9  ;;  %537 = vmatprep.subr.mxu0 %v60_v10  ;;  %v436_v38 = vld [vmem:[%s904_s2 + $0x88] sm:$0xff]  ;;  %v50_v40 = vld [vmem:[%s904_s2] sm:$0xff]  ;;  %v466_v44 = vld [vmem:[%s904_s2 + $0x178] sm:$0xff] }
   0xd   :  { %575 = vmatprep.subr.mxu1 %v445_v11  ;;  %538 = vmatpush3.msra.mxu0 %v60_v10  ;;  %v42_v36 = vmul.f32 0.01, %v34_v30  ;;  %vm38_vm0 = vcmp.ge.f32.partialorder %v34_v30, 0.0  ;;  %v43_v39 = vmul.f32 0.01, %v35_v33  ;;  %vm39_vm1 = vcmp.ge.f32.partialorder %v35_v33, 0.0 }
   0xe   :  { %576 = vmatpush3.msra.mxu1 %v445_v11  ;;  %539 = vmatprep.subr.mxu0 %v59_v12  ;;  %v435_v41 = vld [vmem:[%s904_s2 + $0x80] sm:$0xff]  ;;  %v465_v45 = vld [vmem:[%s904_s2 + $0x170] sm:$0xff]  ;;  %v464_v46 = vld [vmem:[%s904_s2 + $0x168] sm:$0xff] }
   0xf   :  { %577 = vmatprep.subr.mxu1 %v444_v13  ;;  %540 = vmatpush3.msra.mxu0 %v59_v12  ;;  %v814_v42 = vsel %vm38_vm0, %v34_v30, %v42_v36  ;;  %v816_v43 = vsel %vm39_vm1, %v35_v33, %v43_v39  ;;  %v463_v47 = vld [vmem:[%s904_s2 + $0x160] sm:$0xff]  ;;  %v462_v48 = vld [vmem:[%s904_s2 + $0x158] sm:$0xff]  ;;  %v18_v49 = vld [vmem:[%s905_s0 + $0x10] sm:$0xff] }
  0x10   :  { %578 = vmatpush3.msra.mxu1 %v444_v13  ;;  %541 = vmatprep.subr.mxu0 %v58_v14  ;;  %v461_v50 = vld [vmem:[%s904_s2 + $0x150] sm:$0xff]  ;;  %v19_v51 = vld [vmem:[%s905_s0 + $0x18] sm:$0xff]  ;;  %v460_v52 = vld [vmem:[%s904_s2 + $0x148] sm:$0xff]  ;;  %v27_v53 = vmul.f32 %v758_v19, %v18_v49 }
  0x11   :  { %579 = vmatprep.subr.mxu1 %v443_v15  ;;  %542 = vmatpush3.msra.mxu0 %v58_v14  ;;  %v28_v54 = vmul.f32 %v758_v19, %v19_v51  ;;  %v459_v55 = vld [vmem:[%s904_s2 + $0x140] sm:$0xff]  ;;  %v458_v56 = vld [vmem:[%s904_s2 + $0x138] sm:$0xff]  ;;  %v457_v59 = vld [vmem:[%s904_s2 + $0x130] sm:$0xff] }
  0x12   :  { %580 = vmatpush3.msra.mxu1 %v443_v15  ;;  %543 = vmatprep.subr.mxu0 %v57_v16  ;;  %v36_v57 = vadd.f32 %v779_v26, %v27_v53  ;;  %v456_v60 = vld [vmem:[%s904_s2 + $0x128] sm:$0xff]  ;;  %v455_v63 = vld [vmem:[%s904_s2 + $0x120] sm:$0xff]  ;;  %v454_v1 = vld [vmem:[%s904_s2 + $0x118] sm:$0xff] }
  0x13   :  { %581 = vmatprep.subr.mxu1 %v442_v17  ;;  %544 = vmatpush3.msra.mxu0 %v57_v16  ;;  %v37_v58 = vadd.f32 %v779_v26, %v28_v54  ;;  %v453_v3 = vld [vmem:[%s904_s2 + $0x110] sm:$0xff]  ;;  %v452_v4 = vld [vmem:[%s904_s2 + $0x108] sm:$0xff]  ;;  %v451_v5 = vld [vmem:[%s904_s2 + $0x100] sm:$0xff] }
  0x14   :  { %582 = vmatpush3.msra.mxu1 %v442_v17  ;;  %545 = vmatprep.subr.mxu0 %v56_v21  ;;  %v44_v61 = vmul.f32 0.01, %v36_v57  ;;  %vm40_vm2 = vcmp.ge.f32.partialorder %v36_v57, 0.0 }
  0x15   :  { %583 = vmatprep.subr.mxu1 %v441_v22  ;;  %546 = vmatpush3.msra.mxu0 %v56_v21  ;;  %v45_v62 = vmul.f32 0.01, %v37_v58  ;;  %vm41_vm3 = vcmp.ge.f32.partialorder %v37_v58, 0.0 }
  0x16   :  { %584 = vmatpush3.msra.mxu1 %v441_v22  ;;  %547 = vmatprep.subr.mxu0 %v55_v24  ;;  %v48_v0 = vsel %vm40_vm2, %v36_v57, %v44_v61 }
  0x17   :  { %585 = vmatprep.subr.mxu1 %v440_v25  ;;  %548 = vmatpush3.msra.mxu0 %v55_v24  ;;  %v49_v2 = vsel %vm41_vm3, %v37_v58, %v45_v62 }
  0x18   :  { %586 = vmatpush3.msra.mxu1 %v440_v25  ;;  %549 = vmatprep.subr.mxu0 %v54_v28 }
  0x19   :  { %587 = vmatprep.subr.mxu1 %v439_v29  ;;  %550 = vmatpush3.msra.mxu0 %v54_v28 }
  0x1a   :  { %588 = vmatpush3.msra.mxu1 %v439_v29  ;;  %551 = vmatprep.subr.mxu0 %v53_v31 }
  0x1b   :  { %589 = vmatprep.subr.mxu1 %v438_v32  ;;  %552 = vmatpush3.msra.mxu0 %v53_v31 }
  0x1c   :  { %590 = vmatpush3.msra.mxu1 %v438_v32  ;;  %553 = vmatprep.subr.mxu0 %v52_v34 }
  0x1d   :  { %591 = vmatprep.subr.mxu1 %v437_v35  ;;  %554 = vmatpush3.msra.mxu0 %v52_v34 }
  0x1e   :  { %592 = vmatpush3.msra.mxu1 %v437_v35  ;;  %555 = vmatprep.subr.mxu0 %v51_v37 }
  0x1f   :  { %593 = vmatprep.subr.mxu1 %v436_v38  ;;  %556 = vmatpush3.msra.mxu0 %v51_v37 }
  0x20   :  { %594 = vmatpush3.msra.mxu1 %v436_v38  ;;  %557 = vmatprep.subr.mxu0 %v50_v40 }
  0x21   :  { %595 = vmatprep.subr.mxu1 %v435_v41  ;;  %558 = vmatpush3.msra.mxu0 %v50_v40 }
  0x22   :  { %559 = vmatprep.mubr.f32.mxu0 %v814_v42  ;;  %596 = vmatpush3.msra.mxu1 %v435_v41 }
  0x23   :  { %560 = vmatmul.mubr.f32.vlgmr.msra.gmra.mxu0 %v816_v43  ;;  %597 = vmatprep.mubr.f32.mxu1 %v814_v42 }
  0x24   :  { %603 = vmatprep.subr.mxu0 %v466_v44  ;;  %641 = vmatprep.subr.mxu1 %v466_v44 }
  0x25   :  { %598 = vmatmul.mubr.f32.vlgmr.msra.gmra.mxu1 %v816_v43  ;;  %604 = vmatpush3.msra.mxu0 %v466_v44 }
  0x26   :  { %657 = vmatpush3.msra.mxu1 %v466_v44  ;;  %605 = vmatprep.subr.mxu0 %v465_v45 }
  0x27   :  { %642 = vmatprep.subr.mxu1 %v465_v45  ;;  %606 = vmatpush3.msra.mxu0 %v465_v45 }
  0x28   :  { %658 = vmatpush3.msra.mxu1 %v465_v45  ;;  %607 = vmatprep.subr.mxu0 %v464_v46 }
  0x29   :  { %643 = vmatprep.subr.mxu1 %v464_v46  ;;  %608 = vmatpush3.msra.mxu0 %v464_v46 }
  0x2a   :  { %659 = vmatpush3.msra.mxu1 %v464_v46  ;;  %609 = vmatprep.subr.mxu0 %v463_v47 }
  0x2b   :  { %644 = vmatprep.subr.mxu1 %v463_v47  ;;  %610 = vmatpush3.msra.mxu0 %v463_v47 }
  0x2c   :  { %660 = vmatpush3.msra.mxu1 %v463_v47  ;;  %611 = vmatprep.subr.mxu0 %v462_v48 }
  0x2d   :  { %645 = vmatprep.subr.mxu1 %v462_v48  ;;  %612 = vmatpush3.msra.mxu0 %v462_v48 }
  0x2e   :  { %661 = vmatpush3.msra.mxu1 %v462_v48  ;;  %613 = vmatprep.subr.mxu0 %v461_v50 }
  0x2f   :  { %646 = vmatprep.subr.mxu1 %v461_v50  ;;  %614 = vmatpush3.msra.mxu0 %v461_v50 }
  0x30   :  { %662 = vmatpush3.msra.mxu1 %v461_v50  ;;  %615 = vmatprep.subr.mxu0 %v460_v52 }
  0x31   :  { %647 = vmatprep.subr.mxu1 %v460_v52  ;;  %616 = vmatpush3.msra.mxu0 %v460_v52 }
  0x32   :  { %663 = vmatpush3.msra.mxu1 %v460_v52  ;;  %617 = vmatprep.subr.mxu0 %v459_v55 }
  0x33   :  { %648 = vmatprep.subr.mxu1 %v459_v55  ;;  %618 = vmatpush3.msra.mxu0 %v459_v55 }
  0x34   :  { %664 = vmatpush3.msra.mxu1 %v459_v55  ;;  %619 = vmatprep.subr.mxu0 %v458_v56 }
  0x35   :  { %649 = vmatprep.subr.mxu1 %v458_v56  ;;  %620 = vmatpush3.msra.mxu0 %v458_v56 }
  0x36   :  { %665 = vmatpush3.msra.mxu1 %v458_v56  ;;  %621 = vmatprep.subr.mxu0 %v457_v59 }
  0x37   :  { %650 = vmatprep.subr.mxu1 %v457_v59  ;;  %622 = vmatpush3.msra.mxu0 %v457_v59 }
  0x38   :  { %666 = vmatpush3.msra.mxu1 %v457_v59  ;;  %623 = vmatprep.subr.mxu0 %v456_v60 }
  0x39   :  { %651 = vmatprep.subr.mxu1 %v456_v60  ;;  %624 = vmatpush3.msra.mxu0 %v456_v60 }
  0x3a   :  { %667 = vmatpush3.msra.mxu1 %v456_v60  ;;  %625 = vmatprep.subr.mxu0 %v455_v63 }
  0x3b   :  { %652 = vmatprep.subr.mxu1 %v455_v63  ;;  %626 = vmatpush3.msra.mxu0 %v455_v63 }
  0x3c   :  { %668 = vmatpush3.msra.mxu1 %v455_v63  ;;  %562 = vmatprep.mubr.f32.mxu0 %v48_v0 }
  0x3d   :  { %627 = vmatprep.subr.mxu0 %v454_v1  ;;  %653 = vmatprep.subr.mxu1 %v454_v1 }
  0x3e   :  { %563 = vmatmul.mubr.f32.gmra.mxu0 %v49_v2  ;;  %669 = vmatpush3.msra.mxu1 %v454_v1 }
  0x3f   :  { %628 = vmatpush3.msra.mxu0 %v454_v1  ;;  %654 = vmatprep.subr.mxu1 %v453_v3 }
  0x40   :  { %629 = vmatprep.subr.mxu0 %v453_v3  ;;  %600 = vmatprep.mubr.f32.mxu1 %v48_v0 }
  0x41   :  { %630 = vmatpush3.msra.mxu0 %v453_v3  ;;  %670 = vmatpush3.msra.mxu1 %v453_v3 }
  0x42   :  { %631 = vmatprep.subr.mxu0 %v452_v4  ;;  %601 = vmatmul.mubr.f32.gmra.mxu1 %v49_v2 }
  0x43   :  { %655 = vmatprep.subr.mxu1 %v452_v4  ;;  %632 = vmatpush3.msra.mxu0 %v452_v4 }
  0x44   :  { %671 = vmatpush3.msra.mxu1 %v452_v4  ;;  %633 = vmatprep.subr.mxu0 %v451_v5 }
  0x45   :  { %656 = vmatprep.subr.mxu1 %v451_v5  ;;  %634 = vmatpush3.msra.mxu0 %v451_v5 }
  0x46   :  { %672 = vmatpush3.msra.mxu1 %v451_v5  ;;  %635 = vmatprep.mubr.f32.mxu0 %v814_v42 }
  0x47   :  { %638 = vmatprep.mubr.f32.mxu1 %v48_v0  ;;  %636 = vmatmul.mubr.f32.vlgmr.msra.gmra.mxu0 %v816_v43 }
  0x48   :  { %639 = vmatmul.mubr.f32.vlgmr.msra.gmra.mxu1 %v49_v2 }
  0xe3   :  { %v561_v6 = vpop.f32.mrf.mxu0 }
  0xe4   :  { %v361_v12 = vrot.slane %v561_v6, 7 }
  0xe5   :  { %v132_v7 = vpop.f32.mrf.mxu0  ;;  %v599_v8 = vpop.f32.mrf.mxu1 }
  0xe6   :  { %v360_v13 = vrot.slane %v132_v7, 7 }
  0xe7   :  { %v234_v11 = vpop.f32.mrf.mxu1 }
  0xe8   :  { %v362_v18 = vsel %vm359_vm4, %v360_v13, %v361_v12  ;;  %v370_v22 = vsel %vm359_vm4, 0.0, %v360_v13 }
  0xe9   :  { %v373_v27 = vadd.f32 %v599_v8, %v362_v18  ;;  %v372_v34 = vadd.f32 %v370_v22, %v234_v11 }
  0xfe   :  { %v564_v9 = vpop.f32.mrf.mxu0 }
  0xff   :  { %v364_v14 = vrot.slane %v564_v9, 7 }
 0x100   :  { %v142_v10 = vpop.f32.mrf.mxu0 }
 0x101   :  { %v363_v15 = vrot.slane %v142_v10, 7 }
 0x102   :  { %v602_v16 = vpop.f32.mrf.mxu1 }
 0x103   :  { %v365_v19 = vsel %vm359_vm4, %v363_v15, %v364_v14  ;;  %v371_v23 = vsel %vm359_vm4, 0.0, %v363_v15 }
 0x104   :  { %v244_v17 = vpop.f32.mrf.mxu1  ;;  %v375_v26 = vadd.f32 %v602_v16, %v365_v19 }
 0x105   :  { %v374_v35 = vadd.f32 %v371_v23, %v244_v17 }
 0x107   :  { %v637_v20 = vpop.f32.mrf.mxu0 }
 0x108   :  { %v640_v21 = vpop.f32.mrf.mxu1  ;;  %v382_v24 = vrot.slane %v637_v20, 1 }
 0x109   :  { %v385_v25 = vrot.slane %v640_v21, 1  ;;  %v336_v28 = vpop.f32.mrf.mxu0 }
 0x10a   :  { %v346_v29 = vpop.f32.mrf.mxu1  ;;  %v391_v30 = vsel %vm380_vm5, %v382_v24, 0.0  ;;  %v381_v32 = vrot.slane %v336_v28, 1 }
 0x10b   :  { %v392_v31 = vsel %vm380_vm5, %v385_v25, 0.0  ;;  %v384_v33 = vrot.slane %v346_v29, 1  ;;  %v394_v36 = vadd.f32 %v391_v30, %v373_v27 }
 0x10c   :  { %v396_v37 = vadd.f32 %v392_v31, %v375_v26  ;;  %v383_v38 = vsel %vm380_vm5, %v381_v32, %v382_v24 }
 0x10d   :  { %v386_v39 = vsel %vm380_vm5, %v384_v33, %v385_v25  ;;  %398 = vst [vmem:[%s907_s3 + $0x8] sm:$0xff] %v394_v36  ;;  %v393_v40 = vadd.f32 %v383_v38, %v372_v34  ;;  %v412_v42 = vmul.f32 %v394_v36, %v394_v36 }
 0x10e   :  { %400 = vst [vmem:[%s907_s3 + $0x18] sm:$0xff] %v396_v37  ;;  %v395_v41 = vadd.f32 %v386_v39, %v374_v35  ;;  %v414_v48 = vmul.f32 %v396_v37, %v396_v37 }
 0x10f   :  { %397 = vst [vmem:[%s907_s3] sm:$0xff] %v393_v40  ;;  %v401_v43 = vadd.f32 %v394_v36, %v393_v40  ;;  %v411_v44 = vmul.f32 %v393_v40, %v393_v40 }
 0x110   :  { %399 = vst [vmem:[%s907_s3 + $0x10] sm:$0xff] %v395_v41  ;;  %v413_v47 = vmul.f32 %v395_v41, %v395_v41 }
 0x111   :  { %v415_v45 = vadd.f32 %v412_v42, %v411_v44  ;;  %v402_v46 = vadd.f32 %v401_v43, %v395_v41 }
 0x113   :  { %v403_v49 = vadd.f32 %v402_v46, %v396_v37  ;;  %v416_v50 = vadd.f32 %v415_v45, %v413_v47 }
 0x115   :  { %v404_v51 = vrot.slane %v403_v49, 4  ;;  %v417_v52 = vadd.f32 %v416_v50, %v414_v48 }
 0x117   :  { %v405_v53 = vadd.f32 %v404_v51, %v403_v49  ;;  %v418_v54 = vrot.slane %v417_v52, 4 }
 0x119   :  { %v406_v55 = vrot.slane %v405_v53, 2  ;;  %v419_v56 = vadd.f32 %v418_v54, %v417_v52 }
 0x11b   :  { %v407_v57 = vadd.f32 %v406_v55, %v405_v53  ;;  %v420_v58 = vrot.slane %v419_v56, 2 }
 0x11d   :  { %v408_v59 = vrot.slane %v407_v57, 1  ;;  %v421_v60 = vadd.f32 %v420_v58, %v419_v56 }
 0x11f   :  { %v409_v61 = vadd.f32 %v408_v59, %v407_v57  ;;  %v422_v62 = vrot.slane %v421_v60, 1 }
 0x121   :  { %410 = vst [vmem:[%s908_s4] sm:$0x1] %v409_v61  ;;  %v423_v63 = vadd.f32 %v422_v62, %v421_v60 }
 0x123   :  { %424 = vst [vmem:[%s908_s4 + $0x1] sm:$0x1] %v423_v63 }

// kernel: residual_block.3
= control target key start
LH: loop header
LB: loop body
LE: loop exit
PB: predicated region body
PF: predicated region fallthrough
CT: control target
= control target key end

     0   :  { %v597_v3 = vmov 0.0   ;;  %vm350_vm0 = vcmask 1040384   ;;  %vm371_vm1 = vcmask 1046528   ;;  %s879_s2 = inlined_call_operand.vmem [shape: f32[128,256], index: 2, kind: input, shape index: {}]   ;;  %s880_s1 = inlined_call_operand.vmem [shape: f32[128,128], index: 1, kind: input, shape index: {}]   ;;  %s881_s0 = inlined_call_operand.vmem [shape: f32[2,16,128], index: 0, kind: input, shape index: {}]   ;;  %s882_s3 = inlined_call_operand.vmem [shape: f32[128,128], index: 3, kind: input, shape index: {}]   ;;  %s883_s5 = inlined_call_operand.vmem [shape: f32[1,4,128], index: 5, kind: output, shape index: {1}]   ;;  %s884_s4 = inlined_call_operand.vmem [shape: f32[2,16,128], index: 4, kind: output, shape index: {0}]  }
   0x1   :  { %v54_v0 = vld [vmem:[%s879_s2 + $0xf8] sm:$0xff]  ;;  %v53_v2 = vld [vmem:[%s879_s2 + $0xf0] sm:$0xff]  ;;  %119 = vmatprep.mubr.f32.mxu0 %v597_v3  ;;  %v52_v4 = vld [vmem:[%s879_s2 + $0xe8] sm:$0xff] }
   0x2   :  { %v159_v1 = vld [vmem:[%s880_s1 + $0x78] sm:$0xff]  ;;  %55 = vmatprep.subr.mxu0 %v54_v0  ;;  %v158_v5 = vld [vmem:[%s880_s1 + $0x70] sm:$0xff]  ;;  %v51_v6 = vld [vmem:[%s879_s2 + $0xe0] sm:$0xff] }
   0x3   :  { %488 = vmatprep.subr.mxu1 %v159_v1  ;;  %56 = vmatpush1.msra.mxu0 %v53_v2  ;;  %v50_v7 = vld [vmem:[%s879_s2 + $0xd8] sm:$0xff]  ;;  %v157_v8 = vld [vmem:[%s880_s1 + $0x68] sm:$0xff]  ;;  %v49_v9 = vld [vmem:[%s879_s2 + $0xd0] sm:$0xff] }
   0x4   :  { %489 = vmatpush3.msra.mxu1 %v159_v1  ;;  %57 = vmatprep.subr.mxu0 %v52_v4  ;;  %v48_v10 = vld [vmem:[%s879_s2 + $0xc8] sm:$0xff]  ;;  %v156_v11 = vld [vmem:[%s880_s1 + $0x60] sm:$0xff]  ;;  %v46_v13 = vld [vmem:[%s879_s2 + $0xb8] sm:$0xff] }
   0x5   :  { %490 = vmatprep.subr.mxu1 %v158_v5  ;;  %58 = vmatpush1.msra.mxu0 %v51_v6  ;;  %v47_v12 = vld [vmem:[%s879_s2 + $0xc0] sm:$0xff]  ;;  %v155_v14 = vld [vmem:[%s880_s1 + $0x58] sm:$0xff]  ;;  %v45_v15 = vld [vmem:[%s879_s2 + $0xb0] sm:$0xff] }
   0x6   :  { %491 = vmatpush3.msra.mxu1 %v158_v5  ;;  %59 = vmatprep.subr.mxu0 %v50_v7  ;;  %v44_v16 = vld [vmem:[%s879_s2 + $0xa8] sm:$0xff]  ;;  %v154_v17 = vld [vmem:[%s880_s1 + $0x50] sm:$0xff]  ;;  %v43_v18 = vld [vmem:[%s879_s2 + $0xa0] sm:$0xff] }
   0x7   :  { %492 = vmatprep.subr.mxu1 %v157_v8  ;;  %60 = vmatpush1.msra.mxu0 %v49_v9  ;;  %v42_v19 = vld [vmem:[%s879_s2 + $0x98] sm:$0xff]  ;;  %v153_v20 = vld [vmem:[%s880_s1 + $0x48] sm:$0xff]  ;;  %v41_v21 = vld [vmem:[%s879_s2 + $0x90] sm:$0xff] }
   0x8   :  { %493 = vmatpush3.msra.mxu1 %v157_v8  ;;  %61 = vmatprep.subr.mxu0 %v48_v10  ;;  %v40_v22 = vld [vmem:[%s879_s2 + $0x88] sm:$0xff]  ;;  %v152_v23 = vld [vmem:[%s880_s1 + $0x40] sm:$0xff]  ;;  %v38_v25 = vld [vmem:[%s879_s2 + $0x78] sm:$0xff] }
   0x9   :  { %494 = vmatprep.subr.mxu1 %v156_v11  ;;  %62 = vmatpush1.msra.mxu0 %v47_v12  ;;  %v39_v24 = vld [vmem:[%s879_s2 + $0x80] sm:$0xff]  ;;  %v151_v26 = vld [vmem:[%s880_s1 + $0x38] sm:$0xff]  ;;  %v37_v27 = vld [vmem:[%s879_s2 + $0x70] sm:$0xff] }
   0xa   :  { %495 = vmatpush3.msra.mxu1 %v156_v11  ;;  %63 = vmatprep.subr.mxu0 %v46_v13  ;;  %v36_v28 = vld [vmem:[%s879_s2 + $0x68] sm:$0xff]  ;;  %v150_v29 = vld [vmem:[%s880_s1 + $0x30] sm:$0xff]  ;;  %v35_v30 = vld [vmem:[%s879_s2 + $0x60] sm:$0xff] }
   0xb   :  { %496 = vmatprep.subr.mxu1 %v155_v14  ;;  %64 = vmatpush1.msra.mxu0 %v45_v15  ;;  %v34_v31 = vld [vmem:[%s879_s2 + $0x58] sm:$0xff]  ;;  %v149_v32 = vld [vmem:[%s880_s1 + $0x28] sm:$0xff]  ;;  %v33_v33 = vld [vmem:[%s879_s2 + $0x50] sm:$0xff] }
   0xc   :  { %497 = vmatpush3.msra.mxu1 %v155_v14  ;;  %65 = vmatprep.subr.mxu0 %v44_v16  ;;  %v32_v34 = vld [vmem:[%s879_s2 + $0x48] sm:$0xff]  ;;  %v148_v35 = vld [vmem:[%s880_s1 + $0x20] sm:$0xff]  ;;  %v30_v37 = vld [vmem:[%s879_s2 + $0x38] sm:$0xff] }
   0xd   :  { %498 = vmatprep.subr.mxu1 %v154_v17  ;;  %66 = vmatpush1.msra.mxu0 %v43_v18  ;;  %v31_v36 = vld [vmem:[%s879_s2 + $0x40] sm:$0xff]  ;;  %v147_v38 = vld [vmem:[%s880_s1 + $0x18] sm:$0xff]  ;;  %v29_v39 = vld [vmem:[%s879_s2 + $0x30] sm:$0xff] }
   0xe   :  { %499 = vmatpush3.msra.mxu1 %v154_v17  ;;  %67 = vmatprep.subr.mxu0 %v42_v19  ;;  %v28_v40 = vld [vmem:[%s879_s2 + $0x28] sm:$0xff]  ;;  %v146_v41 = vld [vmem:[%s880_s1 + $0x10] sm:$0xff]  ;;  %v27_v42 = vld [vmem:[%s879_s2 + $0x20] sm:$0xff] }
   0xf   :  { %500 = vmatprep.subr.mxu1 %v153_v20  ;;  %68 = vmatpush1.msra.mxu0 %v41_v21  ;;  %v26_v43 = vld [vmem:[%s879_s2 + $0x18] sm:$0xff]  ;;  %v145_v44 = vld [vmem:[%s880_s1 + $0x8] sm:$0xff]  ;;  %v25_v45 = vld [vmem:[%s879_s2 + $0x10] sm:$0xff] }
  0x10   :  { %501 = vmatpush3.msra.mxu1 %v153_v20  ;;  %69 = vmatprep.subr.mxu0 %v40_v22  ;;  %v24_v46 = vld [vmem:[%s879_s2 + $0x8] sm:$0xff]  ;;  %v144_v47 = vld [vmem:[%s880_s1] sm:$0xff]  ;;  %v260_v51 = vld [vmem:[%s882_s3 + $0x78] sm:$0xff] }
  0x11   :  { %502 = vmatprep.subr.mxu1 %v152_v23  ;;  %70 = vmatpush1.msra.mxu0 %v39_v24  ;;  %v23_v48 = vld [vmem:[%s879_s2] sm:$0xff]  ;;  %v781_v50 = vld [vmem:[%s881_s0 + $0x8] sm:$0xff]  ;;  %v259_v52 = vld [vmem:[%s882_s3 + $0x70] sm:$0xff] }
  0x12   :  { %503 = vmatpush3.msra.mxu1 %v152_v23  ;;  %71 = vmatprep.subr.mxu0 %v38_v25  ;;  %v776_v49 = vld [vmem:[%s881_s0] sm:$0xff]  ;;  %v258_v53 = vld [vmem:[%s882_s3 + $0x68] sm:$0xff]  ;;  %v803_v55 = vld [vmem:[%s881_s0 + $0x10] sm:$0xff] }
  0x13   :  { %504 = vmatprep.subr.mxu1 %v151_v26  ;;  %72 = vmatpush1.msra.mxu0 %v37_v27  ;;  %v257_v54 = vld [vmem:[%s882_s3 + $0x60] sm:$0xff]  ;;  %v256_v56 = vld [vmem:[%s882_s3 + $0x58] sm:$0xff]  ;;  %v255_v57 = vld [vmem:[%s882_s3 + $0x50] sm:$0xff] }
  0x14   :  { %505 = vmatpush3.msra.mxu1 %v151_v26  ;;  %73 = vmatprep.subr.mxu0 %v36_v28  ;;  %v22_v58 = vld [vmem:[%s881_s0 + $0x18] sm:$0xff]  ;;  %v254_v59 = vld [vmem:[%s882_s3 + $0x48] sm:$0xff]  ;;  %v253_v60 = vld [vmem:[%s882_s3 + $0x40] sm:$0xff] }
  0x15   :  { %506 = vmatprep.subr.mxu1 %v150_v29  ;;  %74 = vmatpush1.msra.mxu0 %v35_v30  ;;  %v252_v61 = vld [vmem:[%s882_s3 + $0x38] sm:$0xff]  ;;  %v251_v62 = vld [vmem:[%s882_s3 + $0x30] sm:$0xff]  ;;  %v250_v63 = vld [vmem:[%s882_s3 + $0x28] sm:$0xff] }
  0x16   :  { %507 = vmatpush3.msra.mxu1 %v150_v29  ;;  %75 = vmatprep.subr.mxu0 %v34_v31  ;;  %v249_v0 = vld [vmem:[%s882_s3 + $0x20] sm:$0xff]  ;;  %v248_v1 = vld [vmem:[%s882_s3 + $0x18] sm:$0xff]  ;;  %v247_v2 = vld [vmem:[%s882_s3 + $0x10] sm:$0xff] }
  0x17   :  { %508 = vmatprep.subr.mxu1 %v149_v32  ;;  %76 = vmatpush1.msra.mxu0 %v33_v33  ;;  %v245_v4 = vld [vmem:[%s882_s3] sm:$0xff] }
  0x18   :  { %509 = vmatpush3.msra.mxu1 %v149_v32  ;;  %77 = vmatprep.subr.mxu0 %v32_v34 }
  0x19   :  { %510 = vmatprep.subr.mxu1 %v148_v35  ;;  %78 = vmatpush1.msra.mxu0 %v31_v36 }
  0x1a   :  { %511 = vmatpush3.msra.mxu1 %v148_v35  ;;  %79 = vmatprep.subr.mxu0 %v30_v37 }
  0x1b   :  { %512 = vmatprep.subr.mxu1 %v147_v38  ;;  %80 = vmatpush1.msra.mxu0 %v29_v39 }
  0x1c   :  { %513 = vmatpush3.msra.mxu1 %v147_v38  ;;  %81 = vmatprep.subr.mxu0 %v28_v40 }
  0x1d   :  { %514 = vmatprep.subr.mxu1 %v146_v41  ;;  %82 = vmatpush1.msra.mxu0 %v27_v42 }
  0x1e   :  { %515 = vmatpush3.msra.mxu1 %v146_v41  ;;  %83 = vmatprep.subr.mxu0 %v26_v43 }
  0x1f   :  { %516 = vmatprep.subr.mxu1 %v145_v44  ;;  %84 = vmatpush1.msra.mxu0 %v25_v45 }
  0x20   :  { %517 = vmatpush3.msra.mxu1 %v145_v44  ;;  %85 = vmatprep.subr.mxu0 %v24_v46 }
  0x21   :  { %518 = vmatprep.subr.mxu1 %v144_v47  ;;  %86 = vmatpush1.msra.mxu0 %v23_v48 }
  0x22   :  { %519 = vmatpush3.msra.mxu1 %v144_v47  ;;  %520 = vmatprep.mubr.f32.mxu1 %v776_v49 }
  0x23   :  { %120 = vmatmul.mubr.f32.vlgmr.msra.gmra.mxu0 %v776_v49  ;;  %521 = vmatmul.mubr.f32.vlgmr.msra.gmra.mxu1 %v781_v50 }
  0x24   :  { %526 = vmatprep.subr.mxu0 %v260_v51  ;;  %564 = vmatprep.subr.mxu1 %v260_v51 }
  0x25   :  { %527 = vmatpush3.msra.mxu0 %v260_v51  ;;  %580 = vmatpush3.msra.mxu1 %v260_v51 }
  0x26   :  { %528 = vmatprep.subr.mxu0 %v259_v52  ;;  %565 = vmatprep.subr.mxu1 %v259_v52 }
  0x27   :  { %125 = vmatprep.mubr.f32.mxu0 %v597_v3  ;;  %529 = vmatpush3.msra.mxu0 %v259_v52 }
  0x28   :  { %581 = vmatpush3.msra.mxu1 %v259_v52  ;;  %126 = vmatmul.mubr.f32.gmra.mxu0 %v781_v50 }
  0x29   :  { %530 = vmatprep.subr.mxu0 %v258_v53  ;;  %566 = vmatprep.subr.mxu1 %v258_v53 }
  0x2a   :  { %531 = vmatpush3.msra.mxu0 %v258_v53  ;;  %582 = vmatpush3.msra.mxu1 %v258_v53 }
  0x2b   :  { %532 = vmatprep.subr.mxu0 %v257_v54  ;;  %567 = vmatprep.subr.mxu1 %v257_v54 }
  0x2c   :  { %131 = vmatprep.mubr.f32.mxu0 %v597_v3  ;;  %533 = vmatpush3.msra.mxu0 %v257_v54 }
  0x2d   :  { %583 = vmatpush3.msra.mxu1 %v257_v54  ;;  %132 = vmatmul.mubr.f32.gmra.mxu0 %v803_v55 }
  0x2e   :  { %534 = vmatprep.subr.mxu0 %v256_v56  ;;  %568 = vmatprep.subr.mxu1 %v256_v56 }
  0x2f   :  { %535 = vmatpush3.msra.mxu0 %v256_v56  ;;  %584 = vmatpush3.msra.mxu1 %v256_v56 }
  0x30   :  { %536 = vmatprep.subr.mxu0 %v255_v57  ;;  %569 = vmatprep.subr.mxu1 %v255_v57 }
  0x31   :  { %137 = vmatprep.mubr.f32.mxu0 %v597_v3  ;;  %537 = vmatpush3.msra.mxu0 %v255_v57  ;;  %v246_v3 = vld [vmem:[%s882_s3 + $0x8] sm:$0xff] }
  0x32   :  { %585 = vmatpush3.msra.mxu1 %v255_v57  ;;  %138 = vmatmul.mubr.f32.gmra.mxu0 %v22_v58 }
  0x33   :  { %538 = vmatprep.subr.mxu0 %v254_v59  ;;  %570 = vmatprep.subr.mxu1 %v254_v59 }
  0x34   :  { %539 = vmatpush3.msra.mxu0 %v254_v59  ;;  %586 = vmatpush3.msra.mxu1 %v254_v59 }
  0x35   :  { %540 = vmatprep.subr.mxu0 %v253_v60  ;;  %571 = vmatprep.subr.mxu1 %v253_v60 }
  0x36   :  { %541 = vmatpush3.msra.mxu0 %v253_v60  ;;  %587 = vmatpush3.msra.mxu1 %v253_v60 }
  0x37   :  { %542 = vmatprep.subr.mxu0 %v252_v61  ;;  %572 = vmatprep.subr.mxu1 %v252_v61 }
  0x38   :  { %543 = vmatpush3.msra.mxu0 %v252_v61  ;;  %588 = vmatpush3.msra.mxu1 %v252_v61 }
  0x39   :  { %523 = vmatprep.mubr.f32.mxu1 %v803_v55  ;;  %544 = vmatprep.subr.mxu0 %v251_v62 }
  0x3a   :  { %573 = vmatprep.subr.mxu1 %v251_v62  ;;  %524 = vmatmul.mubr.f32.gmra.mxu1 %v22_v58 }
  0x3b   :  { %545 = vmatpush3.msra.mxu0 %v251_v62  ;;  %589 = vmatpush3.msra.mxu1 %v251_v62 }
  0x3c   :  { %546 = vmatprep.subr.mxu0 %v250_v63  ;;  %574 = vmatprep.subr.mxu1 %v250_v63 }
  0x3d   :  { %547 = vmatpush3.msra.mxu0 %v250_v63  ;;  %590 = vmatpush3.msra.mxu1 %v250_v63 }
  0x3e   :  { %548 = vmatprep.subr.mxu0 %v249_v0  ;;  %575 = vmatprep.subr.mxu1 %v249_v0 }
  0x3f   :  { %549 = vmatpush3.msra.mxu0 %v249_v0  ;;  %591 = vmatpush3.msra.mxu1 %v249_v0 }
  0x40   :  { %550 = vmatprep.subr.mxu0 %v248_v1  ;;  %576 = vmatprep.subr.mxu1 %v248_v1 }
  0x41   :  { %551 = vmatpush3.msra.mxu0 %v248_v1  ;;  %592 = vmatpush3.msra.mxu1 %v248_v1 }
  0x42   :  { %552 = vmatprep.subr.mxu0 %v247_v2  ;;  %577 = vmatprep.subr.mxu1 %v247_v2 }
  0x43   :  { %553 = vmatpush3.msra.mxu0 %v247_v2  ;;  %593 = vmatpush3.msra.mxu1 %v247_v2 }
  0x44   :  { %554 = vmatprep.subr.mxu0 %v246_v3  ;;  %578 = vmatprep.subr.mxu1 %v246_v3 }
  0x45   :  { %555 = vmatpush3.msra.mxu0 %v246_v3  ;;  %594 = vmatpush3.msra.mxu1 %v246_v3 }
  0x46   :  { %556 = vmatprep.subr.mxu0 %v245_v4  ;;  %579 = vmatprep.subr.mxu1 %v245_v4 }
  0x47   :  { %557 = vmatpush3.msra.mxu0 %v245_v4  ;;  %595 = vmatpush3.msra.mxu1 %v245_v4 }
  0x48   :  { %558 = vmatprep.mubr.f32.mxu0 %v776_v49  ;;  %561 = vmatprep.mubr.f32.mxu1 %v803_v55 }
  0x49   :  { %559 = vmatmul.mubr.f32.vlgmr.msra.gmra.mxu0 %v781_v50  ;;  %562 = vmatmul.mubr.f32.vlgmr.msra.gmra.mxu1 %v22_v58 }
  0xe3   :  { %v121_v5 = vpop.f32.mrf.mxu0  ;;  %v522_v24 = vpop.f32.mrf.mxu1 }
  0xe4   :  { %v352_v37 = vrot.slane %v522_v24, 7 }
  0xe5   :  { %v123_v6 = vpop.f32.mrf.mxu0  ;;  %v226_v29 = vpop.f32.mrf.mxu1 }
  0xe6   :  { %v426_v12 = vmul.f32 %v123_v6, %v123_v6  ;;  %v351_v38 = vrot.slane %v226_v29, 7 }
  0xe8   :  { %v127_v7 = vpop.f32.mrf.mxu0  ;;  %v353_v43 = vsel %vm350_vm0, %v351_v38, %v352_v37  ;;  %v361_v46 = vsel %vm350_vm0, 0.0, %v351_v38 }
  0xe9   :  { %v364_v49 = vadd.f32 %v353_v43, %v127_v7  ;;  %v363_v57 = vadd.f32 %v361_v46, %v121_v5 }
  0xea   :  { %v129_v8 = vpop.f32.mrf.mxu0 }
  0xeb   :  { %v427_v10 = vmul.f32 %v129_v8, %v129_v8  ;;  %v416_v13 = vadd.f32 %v129_v8, %v123_v6 }
  0xed   :  { %v133_v9 = vpop.f32.mrf.mxu0  ;;  %v430_v16 = vadd.f32 %v427_v10, %v426_v12 }
  0xef   :  { %v135_v11 = vpop.f32.mrf.mxu0 }
  0xf0   :  { %v428_v14 = vmul.f32 %v135_v11, %v135_v11  ;;  %v417_v17 = vadd.f32 %v416_v13, %v135_v11 }
  0xf2   :  { %v139_v15 = vpop.f32.mrf.mxu0  ;;  %v431_v19 = vadd.f32 %v430_v16, %v428_v14 }
  0xf4   :  { %v141_v18 = vpop.f32.mrf.mxu0 }
  0xf5   :  { %v418_v20 = vadd.f32 %v417_v17, %v141_v18  ;;  %v429_v21 = vmul.f32 %v141_v18, %v141_v18 }
  0xf7   :  { %v419_v22 = vrot.slane %v418_v20, 4  ;;  %v432_v23 = vadd.f32 %v431_v19, %v429_v21 }
  0xf9   :  { %v420_v25 = vadd.f32 %v419_v22, %v418_v20  ;;  %v433_v26 = vrot.slane %v432_v23, 4 }
  0xfa   :  { %v525_v34 = vpop.f32.mrf.mxu1 }
  0xfb   :  { %v421_v27 = vrot.slane %v420_v25, 2  ;;  %v434_v28 = vadd.f32 %v433_v26, %v432_v23  ;;  %v355_v41 = vrot.slane %v525_v34, 7 }
  0xfc   :  { %v236_v40 = vpop.f32.mrf.mxu1 }
  0xfd   :  { %v422_v30 = vadd.f32 %v421_v27, %v420_v25  ;;  %v435_v31 = vrot.slane %v434_v28, 2  ;;  %v354_v42 = vrot.slane %v236_v40, 7 }
  0xff   :  { %v423_v32 = vrot.slane %v422_v30, 1  ;;  %v436_v33 = vadd.f32 %v435_v31, %v434_v28  ;;  %v356_v44 = vsel %vm350_vm0, %v354_v42, %v355_v41  ;;  %v362_v50 = vsel %vm350_vm0, 0.0, %v354_v42 }
 0x100   :  { %v366_v54 = vadd.f32 %v356_v44, %v139_v15  ;;  %v365_v61 = vadd.f32 %v362_v50, %v133_v9 }
 0x101   :  { %v424_v35 = vadd.f32 %v423_v32, %v422_v30  ;;  %v437_v36 = vrot.slane %v436_v33, 1 }
 0x103   :  { %425 = vst [vmem:[%s883_s5 + $0x2] sm:$0x1] %v424_v35  ;;  %v438_v39 = vadd.f32 %v437_v36, %v436_v33 }
 0x105   :  { %439 = vst [vmem:[%s883_s5 + $0x3] sm:$0x1] %v438_v39 }
 0x109   :  { %v560_v45 = vpop.f32.mrf.mxu0  ;;  %v563_v48 = vpop.f32.mrf.mxu1 }
 0x10a   :  { %v373_v47 = vrot.slane %v560_v45, 1  ;;  %v376_v51 = vrot.slane %v563_v48, 1 }
 0x10b   :  { %v327_v52 = vpop.f32.mrf.mxu0  ;;  %v337_v56 = vpop.f32.mrf.mxu1 }
 0x10c   :  { %v382_v53 = vsel %vm371_vm1, %v373_v47, 0.0  ;;  %v372_v55 = vrot.slane %v327_v52, 1  ;;  %v383_v59 = vsel %vm371_vm1, %v376_v51, 0.0  ;;  %v375_v60 = vrot.slane %v337_v56, 1 }
 0x10d   :  { %v385_v58 = vadd.f32 %v382_v53, %v364_v49  ;;  %v387_v62 = vadd.f32 %v383_v59, %v366_v54 }
 0x10e   :  { %v374_v63 = vsel %vm371_vm1, %v372_v55, %v373_v47  ;;  %v377_v1 = vsel %vm371_vm1, %v375_v60, %v376_v51 }
 0x10f   :  { %389 = vst [vmem:[%s884_s4 + $0x8] sm:$0xff] %v385_v58  ;;  %v384_v0 = vadd.f32 %v374_v63, %v363_v57  ;;  %391 = vst [vmem:[%s884_s4 + $0x18] sm:$0xff] %v387_v62  ;;  %v386_v2 = vadd.f32 %v377_v1, %v365_v61  ;;  %v403_v3 = vmul.f32 %v385_v58, %v385_v58 }
 0x110   :  { %v405_v9 = vmul.f32 %v387_v62, %v387_v62 }
 0x111   :  { %388 = vst [vmem:[%s884_s4] sm:$0xff] %v384_v0  ;;  %v392_v4 = vadd.f32 %v385_v58, %v384_v0  ;;  %v402_v5 = vmul.f32 %v384_v0, %v384_v0  ;;  %390 = vst [vmem:[%s884_s4 + $0x10] sm:$0xff] %v386_v2  ;;  %v404_v8 = vmul.f32 %v386_v2, %v386_v2 }
 0x113   :  { %v406_v6 = vadd.f32 %v403_v3, %v402_v5  ;;  %v393_v7 = vadd.f32 %v392_v4, %v386_v2 }
 0x115   :  { %v394_v10 = vadd.f32 %v393_v7, %v387_v62  ;;  %v407_v11 = vadd.f32 %v406_v6, %v404_v8 }
 0x117   :  { %v395_v12 = vrot.slane %v394_v10, 4  ;;  %v408_v13 = vadd.f32 %v407_v11, %v405_v9 }
 0x119   :  { %v396_v14 = vadd.f32 %v395_v12, %v394_v10  ;;  %v409_v15 = vrot.slane %v408_v13, 4 }
 0x11b   :  { %v397_v16 = vrot.slane %v396_v14, 2  ;;  %v410_v17 = vadd.f32 %v409_v15, %v408_v13 }
 0x11d   :  { %v398_v18 = vadd.f32 %v397_v16, %v396_v14  ;;  %v411_v19 = vrot.slane %v410_v17, 2 }
 0x11f   :  { %v399_v20 = vrot.slane %v398_v18, 1  ;;  %v412_v21 = vadd.f32 %v411_v19, %v410_v17 }
 0x121   :  { %v400_v22 = vadd.f32 %v399_v20, %v398_v18  ;;  %v413_v23 = vrot.slane %v412_v21, 1 }
 0x123   :  { %401 = vst [vmem:[%s883_s5] sm:$0x1] %v400_v22  ;;  %v414_v24 = vadd.f32 %v413_v23, %v412_v21 }
 0x125   :  { %415 = vst [vmem:[%s883_s5 + $0x1] sm:$0x1] %v414_v24 }

</bundles_post_ra>
